<compile_context>
chip_gen: v7x
topology: tpu7x:2x2x1
jax: 0.10.0
libtpu: 0.0.40
codegen_flags: <defaults>
</compile_context>

<pallas_src>
import functools

import jax
import jax.numpy as jnp
from jax import lax
from jax.experimental import pallas as pl
from jax.experimental.pallas import tpu as pltpu

EPS_BLOCK = 1e-6            # standard LLaMA RMSNorm eps inside blocks
EPS_FINAL = 1.1920929e-07   # torch.finfo(float32).eps (nn.RMSNorm default)


def _rmsnorm_lastdim(x, w, eps):
    ms = jnp.mean(x * x, axis=-1, keepdims=True)
    return x * lax.rsqrt(ms + eps) * w


# ----------------------------------------------------------------------------
# All LLaMA transformer blocks in a single Pallas kernel.
# grid = (B, n_layers); the residual stream is carried in the resident output
# block (same output block index across the layer axis).
# ----------------------------------------------------------------------------
def llama_blocks_kernel(n_heads, x_ref, cos_ref, sin_ref, rotp_ref,
                        wn1_ref, wq_ref, wk_ref, wv_ref, wo_ref,
                        wn2_ref, w1_ref, w3_ref, w2_ref, o_ref):
    layer = pl.program_id(1)

    @pl.when(layer == 0)
    def _():                                 # seed the residual carry
        o_ref[0] = x_ref[0]

    x = o_ref[0]                             # (S, D) f32 residual stream
    S, D = x.shape
    H = n_heads
    Dh = D // H
    cos = cos_ref[...][None, :, :]           # (1, S, Dh)
    sin = sin_ref[...][None, :, :]
    rotp = rotp_ref[...]                     # (Dh, Dh) sign-permutation

    # ---- attention sub-block (pre-norm) -------------------------------------
    h = _rmsnorm_lastdim(x, wn1_ref[0], EPS_BLOCK)          # f32 stats
    h16 = h.astype(jnp.bfloat16)
    q = jnp.dot(h16, wq_ref[0], preferred_element_type=jnp.float32)   # (S, D)
    k = jnp.dot(h16, wk_ref[0], preferred_element_type=jnp.float32)
    v = jnp.dot(h16, wv_ref[0], preferred_element_type=jnp.float32)

    qh = jnp.transpose(q.reshape(S, H, Dh), (1, 0, 2))      # (H, S, Dh)
    kh = jnp.transpose(k.reshape(S, H, Dh), (1, 0, 2))
    vh = jnp.transpose(v.reshape(S, H, Dh), (1, 0, 2))

    def rope(t):   # rotate-half via sign-permutation matmul: rot_half(t) = t @ P
        rot = jnp.einsum('hsd,de->hse', t, rotp,
                         preferred_element_type=jnp.float32)
        return t * cos + rot * sin

    scale = 1.0 / (Dh ** 0.5)
    qh = (rope(qh) * scale).astype(jnp.bfloat16)   # fold 1/sqrt(Dh) into q
    kh = rope(kh).astype(jnp.bfloat16)

    s = jnp.einsum('hqd,hkd->hqk', qh, kh,
                   preferred_element_type=jnp.float32)       # (H, S, S) f32
    row = lax.broadcasted_iota(jnp.int32, (S, S), 0)
    col = lax.broadcasted_iota(jnp.int32, (S, S), 1)
    s = jnp.where((col <= row)[None, :, :], s, -1e30)        # causal mask (f32)

    m = jnp.max(s, axis=-1, keepdims=True)
    p = jnp.exp(s - m)
    denom = jnp.sum(p, axis=-1, keepdims=True)
    p = p * pl.reciprocal(denom, approx=True)                # EUP reciprocal

    ctx = jnp.einsum('hqk,hkd->hqd', p.astype(jnp.bfloat16),
                     vh.astype(jnp.bfloat16),
                     preferred_element_type=jnp.float32)     # (H, S, Dh)
    attn = jnp.transpose(ctx, (1, 0, 2)).reshape(S, D)
    x1 = x + jnp.dot(attn.astype(jnp.bfloat16), wo_ref[0],
                     preferred_element_type=jnp.float32)

    # ---- SwiGLU FFN sub-block (pre-norm) ------------------------------------
    h2 = _rmsnorm_lastdim(x1, wn2_ref[0], EPS_BLOCK)
    h2_16 = h2.astype(jnp.bfloat16)
    gate = jnp.dot(h2_16, w1_ref[0], preferred_element_type=jnp.float32)
    up = jnp.dot(h2_16, w3_ref[0], preferred_element_type=jnp.float32)
    act = gate * jax.nn.sigmoid(gate) * up                   # f32 elementwise
    x2 = x1 + jnp.dot(act.astype(jnp.bfloat16), w2_ref[0],
                      preferred_element_type=jnp.float32)

    o_ref[0] = x2


def run_blocks(x, params, n_heads):
    B, S, D = x.shape
    L = params["wq"].shape[0]
    I = params["w1"].shape[2]
    Dh = D // n_heads

    def rep(shape):                      # replicated across the whole grid
        nd = len(shape)
        return pl.BlockSpec(shape, lambda b, l, _nd=nd: (0,) * _nd)

    def per_layer(shape):                # leading layer-block dim of 1
        nd = len(shape)
        return pl.BlockSpec(shape, lambda b, l, _nd=nd: (l,) + (0,) * (_nd - 1))

    return pl.pallas_call(
        functools.partial(llama_blocks_kernel, n_heads),
        out_shape=jax.ShapeDtypeStruct((B, S, D), jnp.float32),
        grid=(B, L),
        in_specs=[
            pl.BlockSpec((1, S, D), lambda b, l: (b, 0, 0)),
            rep((S, Dh)), rep((S, Dh)), rep((Dh, Dh)),
            per_layer((1, 1, D)),
            per_layer((1, D, D)), per_layer((1, D, D)),
            per_layer((1, D, D)), per_layer((1, D, D)),
            per_layer((1, 1, D)),
            per_layer((1, D, I)), per_layer((1, D, I)), per_layer((1, I, D)),
        ],
        out_specs=pl.BlockSpec((1, S, D), lambda b, l: (b, 0, 0)),
        compiler_params=pltpu.CompilerParams(
            dimension_semantics=("parallel", "arbitrary")),
    )(x, params["cos"], params["sin"], params["rotp"],
      params["wn1"], params["wq"], params["wk"], params["wv"], params["wo"],
      params["wn2"], params["w1"], params["w3"], params["w2"])


# ----------------------------------------------------------------------------
# Final head: RMSNorm over [seq_len, d_model] jointly + Linear(d_model, vocab),
# with the vocab dim tiled by a grid axis (lane-dense output blocks).
# ----------------------------------------------------------------------------
def head_kernel(x_ref, wrms_ref, wlin_ref, blin_ref, o_ref):
    x = x_ref[0]                                   # (S, D) f32
    ms = jnp.mean(x * x)                           # joint mean over (S, D)
    y = x * lax.rsqrt(ms + EPS_FINAL) * wrms_ref[...]
    logits = jnp.dot(y.astype(jnp.bfloat16), wlin_ref[...],
                     preferred_element_type=jnp.float32)     # (S, TV)
    o_ref[0] = logits + blin_ref[...]


def run_head(x, wrms, wlin_t, blin, tile_v=512):
    B, S, D = x.shape
    V = wlin_t.shape[1]
    TV = V if (V <= tile_v or V % tile_v != 0) else tile_v
    NV = V // TV
    return pl.pallas_call(
        head_kernel,
        out_shape=jax.ShapeDtypeStruct((B, S, V), jnp.float32),
        grid=(B, NV),
        in_specs=[
            pl.BlockSpec((1, S, D), lambda b, v: (b, 0, 0)),
            pl.BlockSpec((S, D), lambda b, v: (0, 0)),
            pl.BlockSpec((D, TV), lambda b, v: (0, v)),
            pl.BlockSpec((1, TV), lambda b, v: (0, v)),
        ],
        out_specs=pl.BlockSpec((1, S, TV), lambda b, v: (b, 0, v)),
        compiler_params=pltpu.CompilerParams(
            dimension_semantics=("parallel", "parallel")),
    )(x, wrms, wlin_t, blin)


# ----------------------------------------------------------------------------
# Full model wrapper (embedding gather is JAX glue; heavy compute in Pallas)
# ----------------------------------------------------------------------------
def llama_forward(texts, params, n_heads):
    tokens = texts[:, :-1]                                       # (B, S)
    x = jnp.take(params["embed"], tokens, axis=0)                # (B, S, D) f32
    x = run_blocks(x, params, n_heads)
    logits = run_head(x, params["rms_w"], params["lin_wt"], params["lin_b"])
    return {"logits": logits}


def init_params(key, vocab_size, d_model, n_heads, seq_len, inter_dim,
                n_layers, expected_seq_len):
    assert d_model % n_heads == 0
    Dh = d_model // n_heads
    assert Dh % 2 == 0
    scale = 0.02
    keys = jax.random.split(key, 9)

    def rnd(k, shape):
        return scale * jax.random.normal(k, shape, jnp.float32)

    params = {
        "embed": rnd(keys[0], (vocab_size, d_model)),
        "rms_w": jnp.ones((seq_len, d_model), jnp.float32),
        # linear weights pre-transposed to [in, out], stored in bf16 for the MXU
        "lin_wt": rnd(keys[1], (d_model, vocab_size)).astype(jnp.bfloat16),
        "lin_b": jnp.zeros((1, vocab_size), jnp.float32),
        "wn1": jnp.ones((n_layers, 1, d_model), jnp.float32),
        "wn2": jnp.ones((n_layers, 1, d_model), jnp.float32),
        "wq": rnd(keys[2], (n_layers, d_model, d_model)).astype(jnp.bfloat16),
        "wk": rnd(keys[3], (n_layers, d_model, d_model)).astype(jnp.bfloat16),
        "wv": rnd(keys[4], (n_layers, d_model, d_model)).astype(jnp.bfloat16),
        "wo": rnd(keys[5], (n_layers, d_model, d_model)).astype(jnp.bfloat16),
        "w1": rnd(keys[6], (n_layers, d_model, inter_dim)).astype(jnp.bfloat16),
        "w3": rnd(keys[7], (n_layers, d_model, inter_dim)).astype(jnp.bfloat16),
        "w2": rnd(keys[8], (n_layers, inter_dim, d_model)).astype(jnp.bfloat16),
    }

    # RoPE tables (precomputed up to expected_seq_len, sliced to seq_len)
    inv_freq = 1.0 / (10000.0 ** (jnp.arange(0, Dh, 2, dtype=jnp.float32) / Dh))
    pos = jnp.arange(expected_seq_len, dtype=jnp.float32)
    freqs = jnp.outer(pos, inv_freq)                             # (E, Dh/2)
    params["cos"] = jnp.concatenate([jnp.cos(freqs), jnp.cos(freqs)], -1)[:seq_len]
    params["sin"] = jnp.concatenate([jnp.sin(freqs), jnp.sin(freqs)], -1)[:seq_len]

    # rotate-half sign-permutation matrix P: (t @ P) == concat([-t2, t1])
    half = Dh // 2
    P = jnp.zeros((Dh, Dh), jnp.float32)
    P = P.at[half:, :half].set(-jnp.eye(half, dtype=jnp.float32))
    P = P.at[:half, half:].set(jnp.eye(half, dtype=jnp.float32))
    params["rotp"] = P
    return params


if __name__ == "__main__":
    vocab_size = 64
    d_model = 32
    n_heads = 4
    seq_len = 8
    inter_dim = 64
    n_layers = 2
    expected_seq_len = 16
    batch = 2

    key = jax.random.PRNGKey(0)
    k_params, k_tok = jax.random.split(key)
    params = init_params(k_params, vocab_size, d_model, n_heads, seq_len,
                         inter_dim, n_layers, expected_seq_len)

    # texts has seq_len + 1 tokens; forward uses texts[:, :-1]  ->  (B, seq_len)
    texts = jax.random.randint(k_tok, (batch, seq_len + 1), 0, vocab_size, jnp.int32)

    out = llama_forward(texts, params, n_heads)
    logits = jax.block_until_ready(out["logits"])
    assert logits.shape == (batch, seq_len, vocab_size)
    assert bool(jnp.all(jnp.isfinite(logits)))
    print("KERNEL_OK")
</pallas_src>

<mosaic_0001>
module attributes {stable_mosaic.version = 11 : i64} {
  func.func @llama_blocks_kernel(%arg0: i32, %arg1: i32, %arg2: memref<1x8x32xf32, #tpu.memory_space<vmem>>, %arg3: memref<8x8xf32, #tpu.memory_space<vmem>>, %arg4: memref<8x8xf32, #tpu.memory_space<vmem>>, %arg5: memref<8x8xf32, #tpu.memory_space<vmem>>, %arg6: memref<1x1x32xf32, #tpu.memory_space<vmem>>, %arg7: memref<1x32x32xbf16, #tpu.memory_space<vmem>>, %arg8: memref<1x32x32xbf16, #tpu.memory_space<vmem>>, %arg9: memref<1x32x32xbf16, #tpu.memory_space<vmem>>, %arg10: memref<1x32x32xbf16, #tpu.memory_space<vmem>>, %arg11: memref<1x1x32xf32, #tpu.memory_space<vmem>>, %arg12: memref<1x32x64xbf16, #tpu.memory_space<vmem>>, %arg13: memref<1x32x64xbf16, #tpu.memory_space<vmem>>, %arg14: memref<1x64x32xbf16, #tpu.memory_space<vmem>>, %arg15: memref<1x8x32xf32, #tpu.memory_space<vmem>>) attributes {dimension_semantics = [#tpu.dimension_semantics<parallel>, #tpu.dimension_semantics<arbitrary>], iteration_bounds = array<i64: 2, 2>, scalar_prefetch = 0 : i64, scratch_operands = 0 : i64, tpu.core_type = #tpu.core_type<tc>, window_params = [{transform_indices = @transform_0, window_bounds = array<i64: 1, 8, 32>}, {pipeline_mode = #tpu.pipeline_mode<synchronous>, transform_indices = @transform_1, window_bounds = array<i64: 8, 8>}, {pipeline_mode = #tpu.pipeline_mode<synchronous>, transform_indices = @transform_2, window_bounds = array<i64: 8, 8>}, {pipeline_mode = #tpu.pipeline_mode<synchronous>, transform_indices = @transform_3, window_bounds = array<i64: 8, 8>}, {transform_indices = @transform_4, window_bounds = array<i64: 1, 1, 32>}, {transform_indices = @transform_5, window_bounds = array<i64: 1, 32, 32>}, {transform_indices = @transform_6, window_bounds = array<i64: 1, 32, 32>}, {transform_indices = @transform_7, window_bounds = array<i64: 1, 32, 32>}, {transform_indices = @transform_8, window_bounds = array<i64: 1, 32, 32>}, {transform_indices = @transform_9, window_bounds = array<i64: 1, 1, 32>}, {transform_indices = @transform_10, window_bounds = array<i64: 1, 32, 64>}, {transform_indices = @transform_11, window_bounds = array<i64: 1, 32, 64>}, {transform_indices = @transform_12, window_bounds = array<i64: 1, 64, 32>}, {transform_indices = @transform_13, window_bounds = array<i64: 1, 8, 32>}]} {
    %c0_i32 = arith.constant 0 : i32
    %0 = arith.cmpi eq, %arg1, %c0_i32 : i32
    %1 = arith.extui %0 : i1 to i32
    %c0_i32_0 = arith.constant 0 : i32
    %2 = arith.cmpi ne, %1, %c0_i32_0 : i32
    scf.if %2 {
      %c0_60 = arith.constant 0 : index
      %c0_61 = arith.constant 0 : index
      %c0_62 = arith.constant 0 : index
      %121 = vector.load %arg2[%c0_60, %c0_61, %c0_62] : memref<1x8x32xf32, #tpu.memory_space<vmem>>, vector<1x8x32xf32>
      %122 = vector.shape_cast %121 : vector<1x8x32xf32> to vector<8x32xf32>
      %c0_63 = arith.constant 0 : index
      %c0_64 = arith.constant 0 : index
      %c0_65 = arith.constant 0 : index
      %123 = vector.load %arg15[%c0_63, %c0_64, %c0_65] : memref<1x8x32xf32, #tpu.memory_space<vmem>>, vector<1x8x32xf32>
      %124 = vector.shape_cast %123 : vector<1x8x32xf32> to vector<8x32xf32>
      %125 = vector.shape_cast %122 : vector<8x32xf32> to vector<1x8x32xf32>
      tpu.vector_store %arg15[%c0_63, %c0_64, %c0_65], %125 {strides = array<i32>} : memref<1x8x32xf32, #tpu.memory_space<vmem>>, vector<1x8x32xf32>,
    } else {
    }
    %c0 = arith.constant 0 : index
    %c0_1 = arith.constant 0 : index
    %c0_2 = arith.constant 0 : index
    %3 = vector.load %arg15[%c0, %c0_1, %c0_2] : memref<1x8x32xf32, #tpu.memory_space<vmem>>, vector<1x8x32xf32>
    %4 = vector.shape_cast %3 : vector<1x8x32xf32> to vector<8x32xf32>
    %c0_3 = arith.constant 0 : index
    %c0_4 = arith.constant 0 : index
    %5 = vector.load %arg3[%c0_3, %c0_4] : memref<8x8xf32, #tpu.memory_space<vmem>>, vector<8x8xf32>
    %6 = vector.shape_cast %5 : vector<8x8xf32> to vector<1x8x8xf32>
    %c0_5 = arith.constant 0 : index
    %c0_6 = arith.constant 0 : index
    %7 = vector.load %arg4[%c0_5, %c0_6] : memref<8x8xf32, #tpu.memory_space<vmem>>, vector<8x8xf32>
    %8 = vector.shape_cast %7 : vector<8x8xf32> to vector<1x8x8xf32>
    %c0_7 = arith.constant 0 : index
    %c0_8 = arith.constant 0 : index
    %9 = vector.load %arg5[%c0_7, %c0_8] : memref<8x8xf32, #tpu.memory_space<vmem>>, vector<8x8xf32>
    %c0_9 = arith.constant 0 : index
    %c0_10 = arith.constant 0 : index
    %c0_11 = arith.constant 0 : index
    %10 = vector.load %arg6[%c0_9, %c0_10, %c0_11] : memref<1x1x32xf32, #tpu.memory_space<vmem>>, vector<1x1x32xf32>
    %11 = vector.shape_cast %10 : vector<1x1x32xf32> to vector<1x32xf32>
    %12 = arith.mulf %4, %4 : vector<8x32xf32>
    %cst = arith.constant dense<0.000000e+00> : vector<8xf32>
    %13 = vector.multi_reduction <add>, %12, %cst [1] : vector<8x32xf32> to vector<8xf32>
    %14 = vector.shape_cast %13 : vector<8xf32> to vector<8x1xf32>
    %cst_12 = arith.constant 3.200000e+01 : f32
    %15 = vector.broadcast %cst_12 : f32 to vector<8x1xf32>
    %16 = arith.divf %14, %15 : vector<8x1xf32>
    %cst_13 = arith.constant 9.99999997E-7 : f32
    %17 = vector.broadcast %cst_13 : f32 to vector<8x1xf32>
    %18 = arith.addf %16, %17 : vector<8x1xf32>
    %19 = math.rsqrt %18 : vector<8x1xf32>
    %20 = vector.broadcast %19 : vector<8x1xf32> to vector<8x32xf32>
    %21 = arith.mulf %4, %20 : vector<8x32xf32>
    %22 = vector.broadcast %11 : vector<1x32xf32> to vector<8x32xf32>
    %23 = arith.mulf %21, %22 : vector<8x32xf32>
    %24 = arith.truncf %23 : vector<8x32xf32> to vector<8x32xbf16>
    %c0_14 = arith.constant 0 : index
    %c0_15 = arith.constant 0 : index
    %c0_16 = arith.constant 0 : index
    %25 = vector.load %arg7[%c0_14, %c0_15, %c0_16] : memref<1x32x32xbf16, #tpu.memory_space<vmem>>, vector<1x32x32xbf16>
    %26 = vector.shape_cast %25 : vector<1x32x32xbf16> to vector<32x32xbf16>
    %cst_17 = arith.constant dense<0.000000e+00> : vector<8x32xf32>
    %27 = tpu.matmul %24, %26, %cst_17 {dimension_numbers = #tpu.dot_dimension_numbers<[1], [0], [0], [1], [0, 0, 1, 1], [], []>} : vector<8x32xbf16>, vector<32x32xbf16>, vector<8x32xf32> -> vector<8x32xf32>
    %c0_18 = arith.constant 0 : index
    %c0_19 = arith.constant 0 : index
    %c0_20 = arith.constant 0 : index
    %28 = vector.load %arg8[%c0_18, %c0_19, %c0_20] : memref<1x32x32xbf16, #tpu.memory_space<vmem>>, vector<1x32x32xbf16>
    %29 = vector.shape_cast %28 : vector<1x32x32xbf16> to vector<32x32xbf16>
    %cst_21 = arith.constant dense<0.000000e+00> : vector<8x32xf32>
    %30 = tpu.matmul %24, %29, %cst_21 {dimension_numbers = #tpu.dot_dimension_numbers<[1], [0], [0], [1], [0, 0, 1, 1], [], []>} : vector<8x32xbf16>, vector<32x32xbf16>, vector<8x32xf32> -> vector<8x32xf32>
    %c0_22 = arith.constant 0 : index
    %c0_23 = arith.constant 0 : index
    %c0_24 = arith.constant 0 : index
    %31 = vector.load %arg9[%c0_22, %c0_23, %c0_24] : memref<1x32x32xbf16, #tpu.memory_space<vmem>>, vector<1x32x32xbf16>
    %32 = vector.shape_cast %31 : vector<1x32x32xbf16> to vector<32x32xbf16>
    %cst_25 = arith.constant dense<0.000000e+00> : vector<8x32xf32>
    %33 = tpu.matmul %24, %32, %cst_25 {dimension_numbers = #tpu.dot_dimension_numbers<[1], [0], [0], [1], [0, 0, 1, 1], [], []>} : vector<8x32xbf16>, vector<32x32xbf16>, vector<8x32xf32> -> vector<8x32xf32>
    %34 = vector.shape_cast %27 : vector<8x32xf32> to vector<8x4x8xf32>
    %35 = tpu.transpose %34, [1, 0, 2] : vector<8x4x8xf32> -> vector<4x8x8xf32>
    %36 = vector.shape_cast %30 : vector<8x32xf32> to vector<8x4x8xf32>
    %37 = tpu.transpose %36, [1, 0, 2] : vector<8x4x8xf32> -> vector<4x8x8xf32>
    %38 = vector.shape_cast %33 : vector<8x32xf32> to vector<8x4x8xf32>
    %39 = tpu.transpose %38, [1, 0, 2] : vector<8x4x8xf32> -> vector<4x8x8xf32>
    "tpu.trace_start"() <{level = 10 : i32, message = "hsd,de->hse"}> : () -> ()
    %cst_26 = arith.constant dense<0.000000e+00> : vector<4x8x8xf32>
    %40 = tpu.matmul %35, %9, %cst_26 {dimension_numbers = #tpu.dot_dimension_numbers<[2], [0], [0, 1], [1], [0, 0, 0, 1, 1, 1], [], []>} : vector<4x8x8xf32>, vector<8x8xf32>, vector<4x8x8xf32> -> vector<4x8x8xf32>
    "tpu.trace_stop"() : () -> ()
    %41 = vector.broadcast %6 : vector<1x8x8xf32> to vector<4x8x8xf32>
    %42 = arith.mulf %35, %41 : vector<4x8x8xf32>
    %43 = vector.broadcast %8 : vector<1x8x8xf32> to vector<4x8x8xf32>
    %44 = arith.mulf %40, %43 : vector<4x8x8xf32>
    %45 = arith.addf %42, %44 : vector<4x8x8xf32>
    %cst_27 = arith.constant 0.353553385 : f32
    %46 = vector.broadcast %cst_27 : f32 to vector<4x8x8xf32>
    %47 = arith.mulf %45, %46 : vector<4x8x8xf32>
    %48 = arith.truncf %47 : vector<4x8x8xf32> to vector<4x8x8xbf16>
    "tpu.trace_start"() <{level = 10 : i32, message = "hsd,de->hse"}> : () -> ()
    %cst_28 = arith.constant dense<0.000000e+00> : vector<4x8x8xf32>
    %49 = tpu.matmul %37, %9, %cst_28 {dimension_numbers = #tpu.dot_dimension_numbers<[2], [0], [0, 1], [1], [0, 0, 0, 1, 1, 1], [], []>} : vector<4x8x8xf32>, vector<8x8xf32>, vector<4x8x8xf32> -> vector<4x8x8xf32>
    "tpu.trace_stop"() : () -> ()
    %50 = vector.broadcast %6 : vector<1x8x8xf32> to vector<4x8x8xf32>
    %51 = arith.mulf %37, %50 : vector<4x8x8xf32>
    %52 = vector.broadcast %8 : vector<1x8x8xf32> to vector<4x8x8xf32>
    %53 = arith.mulf %49, %52 : vector<4x8x8xf32>
    %54 = arith.addf %51, %53 : vector<4x8x8xf32>
    %55 = arith.truncf %54 : vector<4x8x8xf32> to vector<4x8x8xbf16>
    "tpu.trace_start"() <{level = 10 : i32, message = "hqd,hkd->hqk"}> : () -> ()
    %cst_29 = arith.constant dense<0.000000e+00> : vector<4x8x8xf32>
    %56 = tpu.matmul %48, %55, %cst_29 {dimension_numbers = #tpu.dot_dimension_numbers<[2], [2], [1], [1], [0, 0, 0, 1, 1, 1], [0], [0]>} : vector<4x8x8xbf16>, vector<4x8x8xbf16>, vector<4x8x8xf32> -> vector<4x8x8xf32>
    "tpu.trace_stop"() : () -> ()
    %57 = tpu.iota {dimensions = array<i32: 0>} : vector<8x8xi32>
    %58 = tpu.iota {dimensions = array<i32: 1>} : vector<8x8xi32>
    %59 = arith.cmpi sle, %58, %57 : vector<8x8xi32>
    %60 = vector.shape_cast %59 : vector<8x8xi1> to vector<1x8x8xi1>
    %cst_30 = arith.constant -1.000000e+30 : f32
    %61 = vector.shape_cast %60 : vector<1x8x8xi1> to vector<1x8x8xi1>
    %62 = vector.broadcast %61 : vector<1x8x8xi1> to vector<4x8x8xi1>
    %63 = vector.broadcast %cst_30 : f32 to vector<4x8x8xf32>
    %64 = arith.select %62, %56, %63 : vector<4x8x8xi1>, vector<4x8x8xf32>
    %cst_31 = arith.constant dense<0xFF800000> : vector<4x8xf32>
    %65 = vector.multi_reduction <maximumf>, %64, %cst_31 [2] : vector<4x8x8xf32> to vector<4x8xf32>
    %66 = vector.shape_cast %65 : vector<4x8xf32> to vector<4x8x1xf32>
    %67 = vector.broadcast %66 : vector<4x8x1xf32> to vector<4x8x8xf32>
    %68 = arith.subf %64, %67 : vector<4x8x8xf32>
    %69 = math.exp %68 : vector<4x8x8xf32>
    %cst_32 = arith.constant dense<0.000000e+00> : vector<4x8xf32>
    %70 = vector.multi_reduction <add>, %69, %cst_32 [2] : vector<4x8x8xf32> to vector<4x8xf32>
    %71 = vector.shape_cast %70 : vector<4x8xf32> to vector<4x8x1xf32>
    %72 = tpu.reciprocal %71 {approx = true} : vector<4x8x1xf32> -> vector<4x8x1xf32>
    %73 = vector.broadcast %72 : vector<4x8x1xf32> to vector<4x8x8xf32>
    %74 = arith.mulf %69, %73 : vector<4x8x8xf32>
    %75 = arith.truncf %74 : vector<4x8x8xf32> to vector<4x8x8xbf16>
    %76 = arith.truncf %39 : vector<4x8x8xf32> to vector<4x8x8xbf16>
    "tpu.trace_start"() <{level = 10 : i32, message = "hqk,hkd->hqd"}> : () -> ()
    %cst_33 = arith.constant dense<0.000000e+00> : vector<4x8x8xf32>
    %77 = tpu.matmul %75, %76, %cst_33 {dimension_numbers = #tpu.dot_dimension_numbers<[2], [1], [1], [2], [0, 0, 0, 1, 1, 2], [0], [0]>} : vector<4x8x8xbf16>, vector<4x8x8xbf16>, vector<4x8x8xf32> -> vector<4x8x8xf32>
    "tpu.trace_stop"() : () -> ()
    %78 = tpu.transpose %77, [1, 0, 2] : vector<4x8x8xf32> -> vector<8x4x8xf32>
    %79 = vector.shape_cast %78 : vector<8x4x8xf32> to vector<8x32xf32>
    %80 = arith.truncf %79 : vector<8x32xf32> to vector<8x32xbf16>
    %c0_34 = arith.constant 0 : index
    %c0_35 = arith.constant 0 : index
    %c0_36 = arith.constant 0 : index
    %81 = vector.load %arg10[%c0_34, %c0_35, %c0_36] : memref<1x32x32xbf16, #tpu.memory_space<vmem>>, vector<1x32x32xbf16>
    %82 = vector.shape_cast %81 : vector<1x32x32xbf16> to vector<32x32xbf16>
    %cst_37 = arith.constant dense<0.000000e+00> : vector<8x32xf32>
    %83 = tpu.matmul %80, %82, %cst_37 {dimension_numbers = #tpu.dot_dimension_numbers<[1], [0], [0], [1], [0, 0, 1, 1], [], []>} : vector<8x32xbf16>, vector<32x32xbf16>, vector<8x32xf32> -> vector<8x32xf32>
    %84 = arith.addf %4, %83 : vector<8x32xf32>
    %c0_38 = arith.constant 0 : index
    %c0_39 = arith.constant 0 : index
    %c0_40 = arith.constant 0 : index
    %85 = vector.load %arg11[%c0_38, %c0_39, %c0_40] : memref<1x1x32xf32, #tpu.memory_space<vmem>>, vector<1x1x32xf32>
    %86 = vector.shape_cast %85 : vector<1x1x32xf32> to vector<1x32xf32>
    %87 = arith.mulf %84, %84 : vector<8x32xf32>
    %cst_41 = arith.constant dense<0.000000e+00> : vector<8xf32>
    %88 = vector.multi_reduction <add>, %87, %cst_41 [1] : vector<8x32xf32> to vector<8xf32>
    %89 = vector.shape_cast %88 : vector<8xf32> to vector<8x1xf32>
    %cst_42 = arith.constant 3.200000e+01 : f32
    %90 = vector.broadcast %cst_42 : f32 to vector<8x1xf32>
    %91 = arith.divf %89, %90 : vector<8x1xf32>
    %cst_43 = arith.constant 9.99999997E-7 : f32
    %92 = vector.broadcast %cst_43 : f32 to vector<8x1xf32>
    %93 = arith.addf %91, %92 : vector<8x1xf32>
    %94 = math.rsqrt %93 : vector<8x1xf32>
    %95 = vector.broadcast %94 : vector<8x1xf32> to vector<8x32xf32>
    %96 = arith.mulf %84, %95 : vector<8x32xf32>
    %97 = vector.broadcast %86 : vector<1x32xf32> to vector<8x32xf32>
    %98 = arith.mulf %96, %97 : vector<8x32xf32>
    %99 = arith.truncf %98 : vector<8x32xf32> to vector<8x32xbf16>
    %c0_44 = arith.constant 0 : index
    %c0_45 = arith.constant 0 : index
    %c0_46 = arith.constant 0 : index
    %100 = vector.load %arg12[%c0_44, %c0_45, %c0_46] : memref<1x32x64xbf16, #tpu.memory_space<vmem>>, vector<1x32x64xbf16>
    %101 = vector.shape_cast %100 : vector<1x32x64xbf16> to vector<32x64xbf16>
    %cst_47 = arith.constant dense<0.000000e+00> : vector<8x64xf32>
    %102 = tpu.matmul %99, %101, %cst_47 {dimension_numbers = #tpu.dot_dimension_numbers<[1], [0], [0], [1], [0, 0, 1, 1], [], []>} : vector<8x32xbf16>, vector<32x64xbf16>, vector<8x64xf32> -> vector<8x64xf32>
    %c0_48 = arith.constant 0 : index
    %c0_49 = arith.constant 0 : index
    %c0_50 = arith.constant 0 : index
    %103 = vector.load %arg13[%c0_48, %c0_49, %c0_50] : memref<1x32x64xbf16, #tpu.memory_space<vmem>>, vector<1x32x64xbf16>
    %104 = vector.shape_cast %103 : vector<1x32x64xbf16> to vector<32x64xbf16>
    %cst_51 = arith.constant dense<0.000000e+00> : vector<8x64xf32>
    %105 = tpu.matmul %99, %104, %cst_51 {dimension_numbers = #tpu.dot_dimension_numbers<[1], [0], [0], [1], [0, 0, 1, 1], [], []>} : vector<8x32xbf16>, vector<32x64xbf16>, vector<8x64xf32> -> vector<8x64xf32>
    %106 = arith.negf %102 : vector<8x64xf32>
    %107 = math.exp %106 : vector<8x64xf32>
    %cst_52 = arith.constant 1.000000e+00 : f32
    %108 = vector.broadcast %cst_52 : f32 to vector<8x64xf32>
    %109 = arith.addf %108, %107 : vector<8x64xf32>
    %110 = arith.divf %108, %109 : vector<8x64xf32>
    %111 = arith.mulf %102, %110 : vector<8x64xf32>
    %112 = arith.mulf %111, %105 : vector<8x64xf32>
    %113 = arith.truncf %112 : vector<8x64xf32> to vector<8x64xbf16>
    %c0_53 = arith.constant 0 : index
    %c0_54 = arith.constant 0 : index
    %c0_55 = arith.constant 0 : index
    %114 = vector.load %arg14[%c0_53, %c0_54, %c0_55] : memref<1x64x32xbf16, #tpu.memory_space<vmem>>, vector<1x64x32xbf16>
    %115 = vector.shape_cast %114 : vector<1x64x32xbf16> to vector<64x32xbf16>
    %cst_56 = arith.constant dense<0.000000e+00> : vector<8x32xf32>
    %116 = tpu.matmul %113, %115, %cst_56 {dimension_numbers = #tpu.dot_dimension_numbers<[1], [0], [0], [1], [0, 0, 1, 1], [], []>} : vector<8x64xbf16>, vector<64x32xbf16>, vector<8x32xf32> -> vector<8x32xf32>
    %117 = arith.addf %84, %116 : vector<8x32xf32>
    %c0_57 = arith.constant 0 : index
    %c0_58 = arith.constant 0 : index
    %c0_59 = arith.constant 0 : index
    %118 = vector.load %arg15[%c0_57, %c0_58, %c0_59] : memref<1x8x32xf32, #tpu.memory_space<vmem>>, vector<1x8x32xf32>
    %119 = vector.shape_cast %118 : vector<1x8x32xf32> to vector<8x32xf32>
    %120 = vector.shape_cast %117 : vector<8x32xf32> to vector<1x8x32xf32>
    tpu.vector_store %arg15[%c0_57, %c0_58, %c0_59], %120 {strides = array<i32>} : memref<1x8x32xf32, #tpu.memory_space<vmem>>, vector<1x8x32xf32>,
    return
  }
  func.func @transform_0(%arg0: i32, %arg1: i32) -> (i32, i32, i32) {
    %c0_i32 = arith.constant 0 : i32
    %c0_i32_0 = arith.constant 0 : i32
    %c0_i32_1 = arith.constant 0 : i32
    return %arg0, %c0_i32, %c0_i32_0 : i32, i32, i32
  }
  func.func @transform_1(%arg0: i32, %arg1: i32) -> (i32, i32) {
    %c0_i32 = arith.constant 0 : i32
    %c0_i32_0 = arith.constant 0 : i32
    %c0_i32_1 = arith.constant 0 : i32
    return %c0_i32, %c0_i32_0 : i32, i32
  }
  func.func @transform_2(%arg0: i32, %arg1: i32) -> (i32, i32) {
    %c0_i32 = arith.constant 0 : i32
    %c0_i32_0 = arith.constant 0 : i32
    %c0_i32_1 = arith.constant 0 : i32
    return %c0_i32, %c0_i32_0 : i32, i32
  }
  func.func @transform_3(%arg0: i32, %arg1: i32) -> (i32, i32) {
    %c0_i32 = arith.constant 0 : i32
    %c0_i32_0 = arith.constant 0 : i32
    %c0_i32_1 = arith.constant 0 : i32
    return %c0_i32, %c0_i32_0 : i32, i32
  }
  func.func @transform_4(%arg0: i32, %arg1: i32) -> (i32, i32, i32) {
    %c0_i32 = arith.constant 0 : i32
    %c0_i32_0 = arith.constant 0 : i32
    %c0_i32_1 = arith.constant 0 : i32
    return %arg1, %c0_i32, %c0_i32_0 : i32, i32, i32
  }
  func.func @transform_5(%arg0: i32, %arg1: i32) -> (i32, i32, i32) {
    %c0_i32 = arith.constant 0 : i32
    %c0_i32_0 = arith.constant 0 : i32
    %c0_i32_1 = arith.constant 0 : i32
    return %arg1, %c0_i32, %c0_i32_0 : i32, i32, i32
  }
  func.func @transform_6(%arg0: i32, %arg1: i32) -> (i32, i32, i32) {
    %c0_i32 = arith.constant 0 : i32
    %c0_i32_0 = arith.constant 0 : i32
    %c0_i32_1 = arith.constant 0 : i32
    return %arg1, %c0_i32, %c0_i32_0 : i32, i32, i32
  }
  func.func @transform_7(%arg0: i32, %arg1: i32) -> (i32, i32, i32) {
    %c0_i32 = arith.constant 0 : i32
    %c0_i32_0 = arith.constant 0 : i32
    %c0_i32_1 = arith.constant 0 : i32
    return %arg1, %c0_i32, %c0_i32_0 : i32, i32, i32
  }
  func.func @transform_8(%arg0: i32, %arg1: i32) -> (i32, i32, i32) {
    %c0_i32 = arith.constant 0 : i32
    %c0_i32_0 = arith.constant 0 : i32
    %c0_i32_1 = arith.constant 0 : i32
    return %arg1, %c0_i32, %c0_i32_0 : i32, i32, i32
  }
  func.func @transform_9(%arg0: i32, %arg1: i32) -> (i32, i32, i32) {
    %c0_i32 = arith.constant 0 : i32
    %c0_i32_0 = arith.constant 0 : i32
    %c0_i32_1 = arith.constant 0 : i32
    return %arg1, %c0_i32, %c0_i32_0 : i32, i32, i32
  }
  func.func @transform_10(%arg0: i32, %arg1: i32) -> (i32, i32, i32) {
    %c0_i32 = arith.constant 0 : i32
    %c0_i32_0 = arith.constant 0 : i32
    %c0_i32_1 = arith.constant 0 : i32
    return %arg1, %c0_i32, %c0_i32_0 : i32, i32, i32
  }
  func.func @transform_11(%arg0: i32, %arg1: i32) -> (i32, i32, i32) {
    %c0_i32 = arith.constant 0 : i32
    %c0_i32_0 = arith.constant 0 : i32
    %c0_i32_1 = arith.constant 0 : i32
    return %arg1, %c0_i32, %c0_i32_0 : i32, i32, i32
  }
  func.func @transform_12(%arg0: i32, %arg1: i32) -> (i32, i32, i32) {
    %c0_i32 = arith.constant 0 : i32
    %c0_i32_0 = arith.constant 0 : i32
    %c0_i32_1 = arith.constant 0 : i32
    return %arg1, %c0_i32, %c0_i32_0 : i32, i32, i32
  }
  func.func @transform_13(%arg0: i32, %arg1: i32) -> (i32, i32, i32) {
    %c0_i32 = arith.constant 0 : i32
    %c0_i32_0 = arith.constant 0 : i32
    %c0_i32_1 = arith.constant 0 : i32
    return %arg0, %c0_i32, %c0_i32_0 : i32, i32, i32
  }
}

</mosaic_0001>

<bundles_post_ra>
// kernel: tpu_custom_call.1
= control target key start
LH: loop header
LB: loop body
LE: loop exit
PB: predicated region body
PF: predicated region fallthrough
CT: control target
= control target key end

     0   :  { %s4310_s0 = inlined_call_operand.hbm [shape: f32[2,8,32], index: 0, kind: input, shape index: {}]   ;;  %s4311_s1 = inlined_call_operand.hbm [shape: f32[8,8], index: 1, kind: input, shape index: {}]   ;;  %s4312_s2 = inlined_call_operand.hbm [shape: f32[8,8], index: 2, kind: input, shape index: {}]   ;;  %s4313_s3 = inlined_call_operand.vmem [shape: f32[8,8], index: 3, kind: input, shape index: {}]   ;;  %s4314_s4 = inlined_call_operand.vmem [shape: f32[2,1,32], index: 4, kind: input, shape index: {}]   ;;  %s4315_s5 = inlined_call_operand.vmem [shape: bf16[2,32,32], index: 5, kind: input, shape index: {}]   ;;  %s4316_s6 = inlined_call_operand.vmem [shape: bf16[2,32,32], index: 6, kind: input, shape index: {}]   ;;  %s4317_s7 = inlined_call_operand.vmem [shape: bf16[2,32,32], index: 7, kind: input, shape index: {}]   ;;  %s4318_s8 = inlined_call_operand.hbm [shape: bf16[2,32,32], index: 8, kind: input, shape index: {}]   ;;  %s4319_s9 = inlined_call_operand.vmem [shape: f32[2,1,32], index: 9, kind: input, shape index: {}]   ;;  %s4320_s10 = inlined_call_operand.hbm [shape: bf16[2,32,64], index: 10, kind: input, shape index: {}]   ;;  %s4321_s11 = inlined_call_operand.hbm [shape: bf16[2,32,64], index: 11, kind: input, shape index: {}]   ;;  %s4322_s12 = inlined_call_operand.vmem [shape: bf16[2,64,32], index: 12, kind: input, shape index: {}]   ;;  %s4323_s13 = inlined_call_operand.hbm [shape: f32[2,8,32], index: 13, kind: output, shape index: {}]  }
   0x1   :  { %4358 = sst [smem:[#allocation33_spill]] %s4310_s0 }
   0x2   :  { %4359 = sst [smem:[#allocation34_spill]] %s4311_s1 }
   0x3   :  { %4360 = sst [smem:[#allocation35_spill]] %s4312_s2 }
   0x4   :  { %4361 = sst [smem:[#allocation36_spill]] %s4313_s3 }
   0x5   :  { %4362 = sst [smem:[#allocation37_spill]] %s4314_s4 }
   0x6   :  { %4363 = sst [smem:[#allocation38_spill]] %s4315_s5 }
   0x7   :  { %4364 = sst [smem:[#allocation39_spill]] %s4316_s6 }
   0x8   :  { %4365 = sst [smem:[#allocation40_spill]] %s4317_s7 }
   0x9   :  { %4366 = sst [smem:[#allocation41_spill]] %s4318_s8 }
   0xa   :  { %4367 = sst [smem:[#allocation42_spill]] %s4319_s9 }
   0xb   :  { %4368 = sst [smem:[#allocation43_spill]] %s4320_s10 }
   0xc   :  { %4369 = sst [smem:[#allocation44_spill]] %s4321_s11 }
   0xd   :  { %4370 = sst [smem:[#allocation45_spill]] %s4322_s12 }
   0xe   :  { %4371 = sst [smem:[#allocation46_spill]] %s4323_s13 }
   0xf   :  { %18 = vsyncpa [#allocation3], 0 }
  0x10   :  { %20 = vsyncpa [#allocation3 + $0x1], 0 }
  0x11   :  { %21 = vsyncpa [#allocation6], 0 }
  0x12   :  { %22 = vsyncpa [#allocation9], 0 }
  0x13   :  { %24 = vsyncpa [#allocation9 + $0x1], 0 }
  0x14   :  { %25 = vsyncpa [#allocation12], 0 }
  0x15   :  { %27 = vsyncpa [#allocation12 + $0x1], 0 }
  0x16   :  { %28 = vsyncpa [#allocation4], 0 }
  0x17   :  { %30 = vsyncpa [#allocation4 + $0x1], 0  ;;  %s3559_s25 = smov 0   ;;  %s3561_s26 = smov 0  }
  0x18   :  { %s3563_s27 = smov 0   ;;  %s3565_s28 = smov 0  }
  0x19   :  { %s3567_s29 = smov 0   ;;  %s3569_s30 = smov 0  }
  0x1a   :  { %s3571_s14 = smov 0   ;;  %s3573_s15 = smov 0  }
  0x1b   :  { %s3575_s16 = smov 0   ;;  %s3577_s17 = smov 0  }
  0x1c   :  { %s3579_s18 = smov 0  }
  0x1d LB: > { %4372 = sst [smem:[#allocation19_spill]] %s3432_s26  ;;  %s3613_s19 = sadd.s32 4294967295, %s3468_s18   ;;  %s3468_s18 = sphi %s3579_s18, %s36_s18   ;;  %s3464_s17 = sphi %s3577_s17, %s4457_s17   ;;  %s3460_s16 = sphi %s3575_s16, %s4456_s16   ;;  %s3456_s15 = sphi %s3573_s15, %s4455_s15   ;;  %s3452_s14 = sphi %s3571_s14, %s4454_s14   ;;  %s3448_s30 = sphi %s3569_s30, %s4453_s30   ;;  %s3444_s29 = sphi %s3567_s29, %s4452_s29   ;;  %s3440_s28 = sphi %s3565_s28, %s4451_s28   ;;  %s3436_s27 = sphi %s3563_s27, %s4450_s27   ;;  %s3432_s26 = sphi %s3561_s26, %s4449_s26   ;;  %s3428_s25 = sphi %s3559_s25, %s4448_s25  }
  0x1e   : > { %4373 = sst [smem:[#allocation20_spill]] %s3436_s27  ;;  %p261_p0 = scmp.ne.s32.totalorder %s3432_s26, %s3428_s25 }
  0x1f   : > { %4374 = sst [smem:[#allocation21_spill]] %s3444_s29  ;;  %p4325_p1 = scmp.eq.s32.totalorder %s3613_s19, 0 }
  0x20   : > { %4375 = sst [smem:[#allocation22_spill]] %s3448_s30  ;;  %p2702_p3 = scmp.ge.s32.totalorder %s3468_s18, 1 }
  0x21   : > { %4376 = sst [smem:[#allocation23_spill]] %s3452_s14  ;;  %p402_p4 = scmp.lt.s32.totalorder %s3468_s18, 5 }
  0x22   : > { %4377 = sst [smem:[#allocation24_spill]] %s3456_s15  ;;  %p3622_p5 = por %p261_p0, %p4325_p1 }
  0x23   : > { %4378 = sst [smem:[#allocation25_spill]] %s3460_s16  ;;  %p3626_p6 = pnand %p2702_p3, %p402_p4 }
  0x24   : > { %4379 = sst [smem:[#allocation26_spill]] %s3464_s17  ;;  %s3470_s22 = smov [#allocation5]  }
  0x25   : > { %s4380_s20 = scalar_select %p3622_p5, 1, 0 }
  0x26   : > { %s4382_s21 = scalar_select %p3626_p6, 1, 0 }
  0x27   : > { %4381 = sst [smem:[#allocation27_spill]] %s4380_s20  ;;  %s415_s23 = sshll.u32 %s3470_s22, 4  ;;  %s416_s23 = int_to_ptr.vmem [resolvable:$true] %s415_s23 }
  0x28   : > { %4383 = sst [smem:[#allocation28_spill]] %s4382_s21  ;;  %p2986_p7 = pneg %p3626_p6 }
  0x29   : > { %s45_s25 = sadd.s32 1, %s3460_s16  ;;  %s4386_s1 = sld [smem:[#allocation34_spill]] }
  0x2a   : > { %p3634_p8 = pnand %p2986_p7, %p4325_p1  ;;  %p3639_p9 = scmp.ge.s32.totalorder %s45_s25, 2 }
  0x2c   : > { %s4384_s24 = scalar_select %p3634_p8, 1, 0 }
  0x2d   : > { %s4385_s13 = scalar_select %p3639_p9, 1, 0 }
  0x2e   : > { %p4335_p11 = pneg %p3634_p8 }
  0x2f   : > { %s3158_s12 = scalar_lea.hbm %s4386_s1, 128 }
  0x30   : > { %p3159_p10 = scmp.ne.s32.totalorder %s4386_s1, %s3158_s12  ;;  %p3165_p0 = scmp.lt.u32.totalorder %s3158_s12, %s4386_s1 }
  0x32   : > { %p3161_p12 = pnand %p4335_p11, %p3159_p10 }
  0x34   : > { %p3162_p13 = pneg %p3161_p12 }
  0x36   : > { %p3167_p3 = pnand %p3165_p0, %p3162_p13 }
  0x38   : > { %3170 = shalt.err (!%p3167_p3)
}
  0x39   : > { %s3171_s5 = scalar_lea.vmem %s416_s23, 128  ;;  %p3179_p1 = scmp.lt.s32.totalorder %s416_s23, %s416_s23 }
  0x3a   : > { %p3172_p4 = scmp.ne.s32.totalorder %s416_s23, %s3171_s5  ;;  %p3180_p5 = scmp.lt.s32.totalorder %s3171_s5, %s3171_s5 }
  0x3c   : > { %p3174_p7 = pnand %p3172_p4, %p4335_p11  ;;  %p3181_p6 = por %p3180_p5, %p3179_p1 }
  0x3e   : > { %p3175_p2 = pneg %p3174_p7 }
  0x40   : > { %p3182_p9 = pnand %p3181_p6, %p3175_p2 }
  0x42   : > { %3185 = shalt.err (!%p3182_p9)
}
  0x43   : > { %2989 = dma.hbm_to_vmem [thread:$0]  (!%p3634_p8), %s4386_s1, 128, %s416_s23, [#allocation6]  }
  0x44   : > { %p4387_p1 = scmp.ne.s32.totalorder %s4385_s13, 0  ;;  %p4334_p2 = scmp.eq.s32.totalorder %s3468_s18, 0 }
  0x45   : > { %s248_s5 = sadd.s32 1, %s3436_s27  ;;  %p255_p5 = scmp.ne.s32.totalorder %s3436_s27, %s3432_s26 }
  0x46   : > { %s4459_s25 = smov (%p4387_p1, %s45_s25), 0  ;;  %p4333_p9 = scmp.lt.s32.totalorder %s3468_s18, 4 }
  0x47   : > { %4388 = sst [smem:[#allocation29_spill]] %s4459_s25  ;;  %s245_s6 = ssub.s32 %s3460_s16, %s4459_s25 }
  0x48   : > { %p246_p6 = scmp.eq.s32.totalorder %s245_s6, 0  ;;  %p257_p10 = por %p255_p5, %p4334_p2 }
  0x49   : > { %s488_s7 = sand.u32 1, %s3468_s18   ;;  %s4330_s15 = sand.u32 1, %s3436_s27  }
  0x4a   : > { %s3680_s12 = scalar_select %p246_p6, %s3436_s27, %s248_s5  }
  0x4b   : > { %s3685_s22 = sshll.u32 %s4330_s15, 4  ;;  %s3688_s23 = sshll.u32 %s3460_s16, 8 }
  0x4c   : > { %4389 = sst [smem:[#allocation30_spill]] %s3680_s12  ;;  %s4390_s8 = sld [smem:[#allocation41_spill]] }
  0x4d   : > { %s492_s6 = scalar_lea.vmem [#allocation8], %s3685_s22  ;;  %p3699_p12 = pnand %p4333_p9, %p257_p10 }
  0x4e   : > { %s499_s5 = sshll.u32 %s492_s6, 4  ;;  %s3705_s15 = scalar_lea.sflag [#allocation9], %s488_s7  ;;  %s3703_s5 = int_to_ptr.vmem [resolvable:$true] %s499_s5 }
  0x4f   : > { %s4391_s25 = scalar_select %p3699_p12, 1, 0 }
  0x50   : > { %p3711_p0 = pneg %p3699_p12 }
  0x52   : > { %s3694_s1 = scalar_lea.hbm %s4390_s8, %s3688_s23  ;;  %s3191_s12 = scalar_lea.hbm %s4390_s8, 512 }
  0x53   : > { %s3186_s16 = scalar_lea.hbm %s3694_s1, 256  ;;  %p3192_p7 = scmp.lt.u32.totalorder %s3694_s1, %s4390_s8 }
  0x54   : > { %p3187_p13 = scmp.ne.s32.totalorder %s3694_s1, %s3186_s16  ;;  %p3193_p5 = scmp.lt.u32.totalorder %s3191_s12, %s3186_s16 }
  0x55   : > { %s4392_s3 = scalar_select %p3711_p0, 1, 0 }
  0x56   : > { %p3189_p3 = pnand %p3711_p0, %p3187_p13  ;;  %p3194_p6 = por %p3193_p5, %p3192_p7 }
  0x57   : > { %p3195_p10 = scmp.lt.u32.totalorder %s3186_s16, %s3694_s1 }
  0x58   : > { %p3190_p4 = pneg %p3189_p3 }
  0x59   : > { %p3196_p9 = por %p3195_p10, %p3194_p6 }
  0x5b   : > { %p3197_p2 = pnand %p3196_p9, %p3190_p4 }
  0x5d   : > { %3200 = shalt.err (!%p3197_p2)
}
  0x5e   : > { %s3201_s7 = scalar_lea.vmem %s3703_s5, 256  ;;  %s3471_s9 = smov [#allocation8]  }
  0x5f   : > { %p3202_p13 = scmp.ne.s32.totalorder %s3703_s5, %s3201_s7  ;;  %s3206_s6 = sshll.u32 %s3471_s9, 4  ;;  %s3207_s6 = int_to_ptr.vmem [resolvable:$false] %s3206_s6 }
  0x60   : > { %s3208_s4 = scalar_lea.vmem %s3207_s6, 512  ;;  %p3209_p1 = scmp.lt.s32.totalorder %s3703_s5, %s3207_s6 }
  0x61   : > { %p3204_p3 = pnand %p3202_p13, %p3711_p0  ;;  %p3210_p8 = scmp.lt.s32.totalorder %s3208_s4, %s3201_s7 }
  0x63   : > { %p3205_p11 = pneg %p3204_p3  ;;  %p3211_p7 = por %p3210_p8, %p3209_p1 }
  0x65   : > { %p3212_p5 = pnand %p3211_p7, %p3205_p11 }
  0x67   : > { %3215 = shalt.err (!%p3212_p5)
}
  0x68   : > { %s4346_s14 = smov 64   ;;  %s4348_s16 = smov 4  }
  0x69   : > { %2999 = dma.hbm_to_vmem [thread:$0]  (!%p3699_p12), %s3694_s1, 256, %s3703_s5, %s3705_s15, %s4346_s14, %s4346_s14, %s4348_s16  }
  0x6a   : > { %s3474_s12 = smov [#allocation7]   ;;  %s4393_s2 = sld [smem:[#allocation35_spill]] }
  0x6b   : > { %s426_s9 = sshll.u32 %s3474_s12, 4  ;;  %p4394_p11 = scmp.ne.s32.totalorder %s4384_s24, 0  ;;  %s427_s9 = int_to_ptr.vmem [resolvable:$true] %s426_s9 }
  0x6d   : > { %p4395_p1 = pneg %p4394_p11 }
  0x70   : > { %s3216_s4 = scalar_lea.hbm %s4393_s2, 128 }
  0x71   : > { %p3217_p8 = scmp.ne.s32.totalorder %s4393_s2, %s3216_s4  ;;  %p3223_p4 = scmp.lt.u32.totalorder %s3216_s4, %s4393_s2 }
  0x73   : > { %p3219_p2 = pnand %p3217_p8, %p4395_p1 }
  0x75   : > { %p3220_p9 = pneg %p3219_p2 }
  0x77   : > { %p3225_p6 = pnand %p3223_p4, %p3220_p9 }
  0x79   : > { %3228 = shalt.err (!%p3225_p6)
}
  0x7a   : > { %s3229_s1 = scalar_lea.vmem %s427_s9, 128  ;;  %p4396_p13 = pmov %p4395_p1 }
  0x7b   : > { %p3230_p10 = scmp.ne.s32.totalorder %s427_s9, %s3229_s1  ;;  %p3237_p5 = scmp.lt.s32.totalorder %s427_s9, %s427_s9 }
  0x7c   : > { %p3238_p12 = scmp.lt.s32.totalorder %s3229_s1, %s3229_s1 }
  0x7d   : > { %p3232_p3 = pnand %p3230_p10, %p4396_p13 }
  0x7e   : > { %p3239_p0 = por %p3238_p12, %p3237_p5 }
  0x7f   : > { %p3233_p7 = pneg %p3232_p3 }
  0x81   : > { %p3240_p1 = pnand %p3239_p0, %p3233_p7 }
  0x83   : > { %3243 = shalt.err (!%p3240_p1)
}
  0x84   : > { %2992 = dma.hbm_to_vmem [thread:$0]  (!%p4394_p11), %s4393_s2, 128, %s427_s9, [#allocation6]  }
  0x85   : > { %s2701_s26 = sadd.s32 4294967294, %s3468_s18   ;;  %s48_s21 = sadd.s32 1, %s3464_s17 }
  0x86   : > { %s55_s24 = sadd.s32 1, %s3448_s30  ;;  %p4397_p12 = scmp.ne.s32.totalorder %s4385_s13, 0 }
  0x87   : > { %p62_p0 = scmp.ne.s32.totalorder %s3448_s30, %s3444_s29  ;;  %p68_p8 = scmp.ne.s32.totalorder %s3444_s29, %s3440_s28 }
  0x88   : > { %s4461_s21 = smov (!%p4397_p12, %s48_s21), %s3464_s17  ;;  %p395_p9 = scmp.eq.s32.totalorder %s2701_s26, 3 }
  0x89   : > { %p50_p2 = scmp.ge.s32.totalorder %s4461_s21, 2  ;;  %p4398_p4 = scmp.eq.s32.totalorder %s3468_s18, 0 }
  0x8a   : > { %p4400_p10 = scmp.eq.s32.totalorder %s3613_s19, 0  ;;  %p4403_p13 = scmp.eq.s32.totalorder %s3613_s19, 3 }
  0x8b   : > { %p3770_p6 = por %p4398_p4, %p62_p0  ;;  %s4463_s21 = smov (%p50_p2, %s4461_s21), 0 }
  0x8c   : > { %p3776_p11 = por %p4400_p10, %p68_p8  ;;  %4402 = sst [smem:[#allocation31_spill]] %s4463_s21 }
  0x8d   : > { %p3784_p3 = por %p4403_p13, %p62_p0  ;;  %p3788_p7 = por %p395_p9, %p68_p8 }
  0x8e   : > { %s4401_s12 = scalar_select %p3776_p11, 1, 0 }
  0x8f   : > { %s4404_s13 = scalar_select %p3784_p3, 1, 0 }
  0x90   : > { %s4405_s9 = scalar_select %p3788_p7, 1, 0 }
  0x91   : > { %s52_s6 = ssub.s32 %s3464_s17, %s4463_s21  ;;  %s440_s7 = sand.u32 1, %s3448_s30  }
  0x92   : > { %p53_p5 = scmp.eq.s32.totalorder %s52_s6, 0  ;;  %s2706_s4 = sshll.u32 %s440_s7, 3 }
  0x93   : > { %s2707_s1 = sshll.u32 %s3464_s17, 7  ;;  %s4407_s0 = sld [smem:[#allocation33_spill]] }
  0x94   : > { %s3797_s8 = scalar_select %p53_p5, %s3448_s30, %s55_s24  }
  0x95   : > { %s444_s16 = scalar_lea.vmem [#allocation2], %s2706_s4  ;;  %p4408_p1 = scmp.lt.s32.totalorder %s3468_s18, 4 }
  0x96   : > { %4406 = sst [smem:[#allocation32_spill]] %s3797_s8  ;;  %s451_s2 = sshll.u32 %s444_s16, 4  ;;  %s3812_s2 = int_to_ptr.vmem [resolvable:$true] %s451_s2 }
  0x97   : > { %p3808_p12 = pnand %p4408_p1, %p3770_p6  ;;  %s4410_s10 = sld [smem:[#allocation43_spill]] }
  0x98   : > { %s441_s20 = scalar_lea.sflag [#allocation3], %s440_s7 }
  0x99   : > { %s3802_s14 = scalar_lea.hbm %s4407_s0, %s2707_s1  ;;  %p3246_p8 = pneg %p3808_p12 }
  0x9a   : > { %s3244_s26 = scalar_lea.hbm %s3802_s14, 128  ;;  %s3249_s4 = scalar_lea.hbm %s4407_s0, 256 }
  0x9b   : > { %p3245_p0 = scmp.ne.s32.totalorder %s3802_s14, %s3244_s26  ;;  %p3250_p4 = scmp.lt.u32.totalorder %s3802_s14, %s4407_s0 }
  0x9c   : > { %p3251_p6 = scmp.lt.u32.totalorder %s3249_s4, %s3244_s26  ;;  %p3253_p13 = scmp.lt.u32.totalorder %s3244_s26, %s3802_s14 }
  0x9d   : > { %s3818_s1 = scalar_lea.hbm %s4410_s10, %s3688_s23  ;;  %p3247_p2 = pnand %p3246_p8, %p3245_p0 }
  0x9e   : > { %p3252_p10 = por %p3251_p6, %p3250_p4 }
  0x9f   : > { %p3248_p9 = pneg %p3247_p2 }
  0xa0   : > { %p3254_p5 = por %p3253_p13, %p3252_p10 }
  0xa2   : > { %p3255_p1 = pnand %p3254_p5, %p3248_p9 }
  0xa4   : > { %3258 = shalt.err (!%p3255_p1)
}
  0xa5   : > { %s3259_s7 = scalar_lea.vmem %s3812_s2, 128  ;;  %s3475_s24 = smov [#allocation2]  }
  0xa6   : > { %p3260_p0 = scmp.ne.s32.totalorder %s3812_s2, %s3259_s7  ;;  %s3264_s6 = sshll.u32 %s3475_s24, 4  ;;  %s3265_s6 = int_to_ptr.vmem [resolvable:$false] %s3264_s6 }
  0xa7   : > { %s3266_s17 = scalar_lea.vmem %s3265_s6, 256  ;;  %p3267_p3 = scmp.lt.s32.totalorder %s3812_s2, %s3265_s6 }
  0xa8   : > { %p3262_p2 = pnand %p3260_p0, %p3246_p8  ;;  %p3268_p4 = scmp.lt.s32.totalorder %s3266_s17, %s3259_s7 }
  0xaa   : > { %p3263_p7 = pneg %p3262_p2  ;;  %p3269_p6 = por %p3268_p4, %p3267_p3 }
  0xac   : > { %p3270_p10 = pnand %p3269_p6, %p3263_p7 }
  0xae   : > { %3273 = shalt.err (!%p3270_p10)
}
  0xaf   : > { %2996 = dma.hbm_to_vmem [thread:$0]  (!%p3808_p12), %s3802_s14, 128, %s3812_s2, %s441_s20  }
  0xb0   : > { %s519_s8 = scalar_lea.vmem [#allocation10], %s3685_s22  ;;  %s3274_s16 = scalar_lea.hbm %s3818_s1, 256 }
  0xb1   : > { %s526_s26 = sshll.u32 %s519_s8, 4  ;;  %p3275_p8 = scmp.ne.s32.totalorder %s3818_s1, %s3274_s16  ;;  %s3846_s26 = int_to_ptr.vmem [resolvable:$true] %s526_s26 }
  0xb2   : > { %p4411_p3 = scmp.ne.s32.totalorder %s4392_s3, 0  ;;  %s3279_s4 = scalar_lea.hbm %s4410_s10, 512 }
  0xb3   : > { %p3280_p13 = scmp.lt.u32.totalorder %s3818_s1, %s4410_s10  ;;  %p3281_p5 = scmp.lt.u32.totalorder %s3279_s4, %s3274_s16 }
  0xb4   : > { %p3277_p7 = pnand %p3275_p8, %p4411_p3  ;;  %p3283_p12 = scmp.lt.u32.totalorder %s3274_s16, %s3818_s1 }
  0xb5   : > { %p3282_p1 = por %p3281_p5, %p3280_p13 }
  0xb6   : > { %p3278_p9 = pneg %p3277_p7 }
  0xb7   : > { %p3284_p0 = por %p3283_p12, %p3282_p1 }
  0xb9   : > { %p3285_p2 = pnand %p3284_p0, %p3278_p9 }
  0xbb   : > { %3288 = shalt.err (!%p3285_p2)
}
  0xbc   : > { %s3289_s2 = scalar_lea.vmem %s3846_s26, 256  ;;  %s3476_s14 = smov [#allocation10]  }
  0xbd   : > { %p3290_p4 = scmp.ne.s32.totalorder %s3846_s26, %s3289_s2  ;;  %s3294_s20 = sshll.u32 %s3476_s14, 4  ;;  %s3295_s20 = int_to_ptr.vmem [resolvable:$false] %s3294_s20 }
  0xbe   : > { %s3296_s6 = scalar_lea.vmem %s3295_s20, 512  ;;  %p3297_p8 = scmp.lt.s32.totalorder %s3846_s26, %s3295_s20 }
  0xbf   : > { %p3292_p6 = pnand %p3290_p4, %p4411_p3  ;;  %p3298_p7 = scmp.lt.s32.totalorder %s3296_s6, %s3289_s2 }
  0xc1   : > { %p3293_p10 = pneg %p3292_p6  ;;  %p3299_p13 = por %p3298_p7, %p3297_p8 }
  0xc3   : > { %p3300_p5 = pnand %p3299_p13, %p3293_p10 }
  0xc5   : > { %3303 = shalt.err (!%p3300_p5)
}
  0xc6   : > { %p4412_p9 = scmp.ne.s32.totalorder %s4391_s25, 0  ;;  %s4413_s17 = smov 4  }
  0xc7   : > { %s4414_s8 = smov 64   ;;  %s4415_s11 = sld [smem:[#allocation44_spill]] }
  0xc8   : > { %3002 = dma.hbm_to_vmem [thread:$0]  (!%p4412_p9), %s3818_s1, 256, %s3846_s26, %s3705_s15, %s4414_s8, %s4414_s8, %s4413_s17  }
  0xc9   : > { %s540_s4 = scalar_lea.vmem [#allocation11], %s3685_s22  ;;  %s4416_s24 = sand.u32 1, %s3436_s27  }
  0xca   : > { %s547_s7 = sshll.u32 %s540_s4, 4  ;;  %s3884_s2 = scalar_lea.sflag [#allocation12], %s4416_s24  ;;  %s3880_s7 = int_to_ptr.vmem [resolvable:$true] %s547_s7 }
  0xcd   : > { %s3877_s21 = scalar_lea.hbm %s4415_s11, %s3688_s23  ;;  %s3309_s23 = scalar_lea.hbm %s4415_s11, 512 }
  0xce   : > { %s3304_s14 = scalar_lea.hbm %s3877_s21, 256  ;;  %p3310_p2 = scmp.lt.u32.totalorder %s3877_s21, %s4415_s11 }
  0xcf   : > { %p3305_p1 = scmp.ne.s32.totalorder %s3877_s21, %s3304_s14  ;;  %p3311_p4 = scmp.lt.u32.totalorder %s3309_s23, %s3304_s14 }
  0xd0   : > { %p3313_p10 = scmp.lt.u32.totalorder %s3304_s14, %s3877_s21 }
  0xd1   : > { %p3307_p12 = pnand %p3305_p1, %p4411_p3  ;;  %p3312_p6 = por %p3311_p4, %p3310_p2 }
  0xd3   : > { %p3308_p0 = pneg %p3307_p12  ;;  %p3314_p8 = por %p3313_p10, %p3312_p6 }
  0xd5   : > { %p3315_p7 = pnand %p3314_p8, %p3308_p0 }
  0xd7   : > { %3318 = shalt.err (!%p3315_p7)
}
  0xd8   : > { %s3319_s22 = scalar_lea.vmem %s3880_s7, 256  ;;  %s3477_s6 = smov [#allocation11]  }
  0xd9   : > { %p3320_p13 = scmp.ne.s32.totalorder %s3880_s7, %s3319_s22  ;;  %s3324_s16 = sshll.u32 %s3477_s6, 4  ;;  %s3325_s16 = int_to_ptr.vmem [resolvable:$false] %s3324_s16 }
  0xda   : > { %s3326_s5 = scalar_lea.vmem %s3325_s16, 512  ;;  %p3327_p12 = scmp.lt.s32.totalorder %s3880_s7, %s3325_s16 }
  0xdb   : > { %p3322_p5 = pnand %p3320_p13, %p4411_p3  ;;  %p3328_p11 = scmp.lt.s32.totalorder %s3326_s5, %s3319_s22 }
  0xdd   : > { %p3323_p1 = pneg %p3322_p5  ;;  %p3329_p2 = por %p3328_p11, %p3327_p12 }
  0xdf   : > { %p3330_p4 = pnand %p3329_p2, %p3323_p1 }
  0xe1   : > { %3333 = shalt.err (!%p3330_p4)
}
  0xe2   : > { %3005 = dma.hbm_to_vmem [thread:$0]  (!%p4412_p9), %s3877_s21, 256, %s3880_s7, %s3884_s2, %s4414_s8, %s4414_s8, %s4413_s17  }
  0xe3   : > { %s4417_s3 = sld [smem:[#allocation28_spill]] }
  0xe9   : > { %p4418_p3 = scmp.ne.s32.totalorder %s4417_s3, 0 }
  0xea   : > { %s3914_s4 = sand.u32 (!%p4418_p3), 1, %s3444_s29   ;;  %p4419_p11 = scmp.ne.s32.totalorder (!%p4418_p3), %s4401_s12, 0 }
  0xeb   : > { %567 = sbr.rel (%p4418_p3) target bundleno = 2814 (0xafe), region = 72  ;;  %s4354_s24 = sshll.u32 (!%p4418_p3), %s3914_s4, 3 }
  0xec   : > { %s570_s14 = scalar_lea.sflag (!%p4418_p3), [#allocation3], %s3914_s4  ;;  %s573_s25 = scalar_lea.vmem (!%p4418_p3), [#allocation2], %s4354_s24 }
  0xf2   : > { %3407 = dma.done.wait (%p4419_p11), %s570_s14, 128  }
  0xf3   : > { %3409 = vsyncadd (%p4419_p11), %s570_s14, 4294967168  ;;  %p4420_p9 = scmp.eq.s32.totalorder %s3613_s19, 0 }
  0xf5   : > { %3411 = dma.done.wait (%p4420_p9), [#allocation6], 256   ;;  %p4421_p0 = pmov %p4420_p9 }
  0xf6   : > { %s4422_s17 = sld [smem:[#allocation19_spill]]  ;;  %s4423_s8 = sld [smem:[#allocation27_spill]] }
  0xf7   : > { %3413 = vsyncadd (%p4421_p0), [#allocation6], 4294967040  ;;  %s586_s21 = sand.u32 1, %s3613_s19  }
  0xf8   : > { %s587_s15 = scalar_lea.sflag [#allocation9], %s586_s21 }
  0xfc   : > { %s588_s7 = sand.u32 1, %s4422_s17   ;;  %p4424_p6 = scmp.ne.s32.totalorder %s4423_s8, 0 }
  0xfd   : > { %s3930_s2 = sshll.u32 %s588_s7, 4 }
  0xfe   : > { %3415 = dma.done.wait (%p4424_p6), %s587_s15, 512  }
  0xff   : > { %3417 = vsyncadd (%p4424_p6), %s587_s15, 4294966784  ;;  %s605_s23 = scalar_lea.sflag [#allocation12], %s588_s7 }
 0x100   : > { %3419 = dma.done.wait (%p4424_p6), %s605_s23, 256  }
 0x101   : > { %3421 = vsyncadd (%p4424_p6), %s605_s23, 4294967040  ;;  %s4425_s19 = sld [smem:[#allocation23_spill]]  ;;  %s4427_s21 = sld [smem:[#allocation38_spill]] }
 0x102   : > { %s4428_s23 = sld [smem:[#allocation39_spill]]  ;;  %s4429_s24 = sld [smem:[#allocation40_spill]] }
 0x103   : > { %s4430_s6 = sld [smem:[#allocation42_spill]]  ;;  %s4431_s29 = sld [smem:[#allocation45_spill]] }
 0x104   : > { %s4432_s14 = sshll.u32 %s3914_s4, 3 }
 0x105   : > { %s3975_s17 = scalar_lea.vmem [#allocation13], %s4432_s14 }
 0x107   : > { %p692_p10 = scmp.lt.s32.totalorder %s4425_s19, 1  ;;  %p2733_p8 = scmp.ne.s32.totalorder %s4425_s19, 0 }
 0x108   : > { %v723_v0 = vld [vmem:[%s573_s25] sm:$0xff] (!%p2733_p8)  ;;  %vm724_vm0 = vcmask (!%p2733_p8), 261120  }
 0x109   : > { %s3945_s20 = scalar_select %p692_p10, %s4425_s19, 1 }
 0x10a   : > { %722 = sbr.rel (%p2733_p8) target bundleno = 273 (0x111), region = 100  ;;  %725 = vst.msk [vmem:[%s3975_s17] sm:$0xff] (!%p2733_p8), %vm724_vm0, %v723_v0 }
 0x10b   : > { %s2791_s3 = sshll.u32 %s3945_s20, 4  ;;  %s712_s11 = scalar_lea.vmem %s4430_s6, %s3945_s20 }
 0x10c   : > { %s699_s8 = scalar_lea.vmem %s4427_s21, %s2791_s3  ;;  %s3958_s26 = scalar_lea.vmem %s4428_s23, %s2791_s3 }
 0x10d   : > { %s709_s0 = scalar_lea.vmem %s4429_s24, %s2791_s3  ;;  %s2794_s30 = sshll.u32 %s3945_s20, 5 }
 0x10e   : > { %s3971_s27 = scalar_lea.vmem %s4431_s29, %s2794_s30 }
 0x111 PF: > { %v3980_v1 = vld [vmem:[%s3975_s17] sm:$0xff]  ;;  %vm732_vm1 = vcmask 261120   ;;  %v3478_v6 = vmov 0.0   ;;  %vm3479_vm2 = vmmov 0   ;;  %s4433_s29 = sld [smem:[#allocation37_spill]]  ;;  %s3480_s24 = smov 120   ;;  %v935_v34 = vlaneseq }
 0x112   : > { %v731_v2 = vmul.f32 %v3980_v1, %v3980_v1  ;;  %v3118_v4 = vld [vmem:[%s699_s8] sm:$0xff]   ;;  %2844 = vmatprep.subr.bf16.mxu1 %v3478_v6  ;;  %2860 = vmatprep.subr.bf16.mxu0 %v3478_v6  ;;  %v3120_v7 = vld [vmem:[%s699_s8 + $0x8] sm:$0xff]   ;;  %s3481_s25 = smov 112   ;;  %s3482_s1 = smov 104   ;;  %v3483_v32 = vmov 1983009808  }
 0x113   : > { %v3119_v5 = vld [vmem:[%s709_s0] sm:$0xff]   ;;  %2845 = vmatpush3.bf16.msra.mxu1 %v3118_v4  ;;  %v3121_v8 = vld [vmem:[%s709_s0 + $0x8] sm:$0xff]   ;;  %2848 = vmatprep.mubr.msk.bf16.mxu1 %vm3479_vm2, %v3478_v6  ;;  %s4435_s19 = sld [smem:[#allocation36_spill]]  ;;  %v933_v33 = vunpack.c.l.s4 %v3483_v32  ;;  %v3484_v36 = vmov 1934713408   ;;  %v4027_v39 = vshrl.u32 %v935_v34, 7 }
 0x114   : > { %v733_v3 = vsel %vm732_vm1, %v731_v2, 0.0  ;;  %2861 = vmatpush3.bf16.msra.mxu0 %v3119_v5  ;;  %2846 = vmatprep.subr.bf16.mxu1 %v3478_v6  ;;  %v3122_v16 = vld [vmem:[%s3958_s26] sm:$0xff]   ;;  %v3123_v18 = vld [vmem:[%s3958_s26 + $0x8] sm:$0xff]   ;;  %v965_v37 = vunpack.c.l.s4 %v3484_v36  ;;  %vm1358_vm3 = vcmask 64512   ;;  %vm1839_vm5 = vcmask 1043456   ;;  %s4436_s5 = scalar_lea.vmem [#allocation8], %s3930_s2 }
 0x115   : > { %734 = vadd.xlane.f32.xlu0 %v733_v3  ;;  %2862 = vmatprep.subr.bf16.mxu0 %v3478_v6  ;;  %v934_v38 = vunpack.c.0.s8 %v933_v33  ;;  %s4437_s3 = smov %s4436_s5  ;;  %s3485_s21 = smov 16   ;;  %vm2170_vm6 = vcmask 130048   ;;  %vm2172_vm7 = vcmask 195584   ;;  %vm2408_vm8 = vcmask 523264  }
 0x116   : > { %2864 = vmatprep.mubr.msk.bf16.mxu0 %vm3479_vm2, %v3478_v6  ;;  %v966_v41 = vunpack.c.0.s8 %v965_v37  ;;  %s3486_s8 = smov 8   ;;  %s3487_s7 = smov 24  }
 0x117   : > { %2847 = vmatpush3.bf16.msra.mxu1 %v3120_v7  ;;  %s4434_s30 = scalar_lea.vmem %s4433_s29, %s3945_s20  ;;  %v4030_v42 = vsub.s32 %v934_v38, %v4027_v39  ;;  %s4438_s15 = scalar_lea.vmem [#allocation10], %s3930_s2 }
 0x118   : > { %2863 = vmatpush3.bf16.msra.mxu0 %v3121_v8  ;;  %2852 = vmatprep.subr.bf16.mxu1 %v3478_v6  ;;  %v2734_v13 = vld [vmem:[%s4434_s30] ss:$0 sm:$0xff]  ;;  %v4033_v49 = vsub.s32 %v966_v41, %v4027_v39  ;;  %s4439_s23 = scalar_lea.vmem [#allocation11], %s3930_s2  ;;  %s4440_s22 = smov %s4438_s15 }
 0x119   : > { %v729_v31 = vld [vmem:[%s4435_s19] sm:$0xff]  ;;  %s4441_s6 = smov %s4439_s23  ;;  %s2468_s20 = sshll.u32 %s3975_s17, 4  ;;  %s4247_s20 = int_to_ptr.vmem [resolvable:$true] %s2468_s20 }
 0x11a   : > { %2876 = vmatprep.subr.mxu0 %v729_v31  ;;  %s4444_s29 = sld [smem:[#allocation46_spill]]  ;;  %p4446_p13 = scmp.ne.s32.totalorder %s4404_s13, 0 }
 0x11b   : > { %s3488_s12 = smov [#allocation13]  }
 0x11c   : > { %s3338_s26 = sshll.u32 %s3488_s12, 4  ;;  %s3339_s26 = int_to_ptr.vmem [resolvable:$false] %s3338_s26 }
 0x11d   : > { %s3340_s19 = scalar_lea.vmem %s3339_s26, 256  ;;  %p3341_p12 = scmp.lt.s32.totalorder %s4247_s20, %s3339_s26 }
 0x1a2   : > { %v735_v9 = vpop.xlane.xlu0 %734 }
 0x1a3   : > { %v737_v10 = vmul.f32 0.03125, %v735_v9 }
 0x1a5   : > { %v738_v11 = vadd.f32 1e-06, %v737_v10 }
 0x1a7   : > { %3134 = vrsqrt.f32 %v738_v11 }
 0x1b1   : > { %v3135_v12 = vpop.eup %3134 }
 0x1b2   : > { %v740_v14 = vmul.f32 %v3135_v12, %v3980_v1 }
 0x1b4   : > { %v747_v15 = vmul.f32 %v2734_v13, %v740_v14 }
 0x1b6   : > { %v748_v17 = vpack.c.bf16 %v747_v15, %v747_v15 }
 0x1b8   : > { %2849 = vmatmul.mubr.msk.bf16.vlgmr.msra.gmra.mrb[0].mxu1 %vm732_vm1, %v748_v17  ;;  %2865 = vmatmul.mubr.msk.bf16.vlgmr.msra.gmra.mrb[0].mxu0 %vm732_vm1, %v748_v17 }
 0x1b9   : > { %2853 = vmatpush3.bf16.msra.mxu1 %v3122_v16  ;;  %2856 = vmatprep.mubr.msk.bf16.mxu1 %vm3479_vm2, %v3478_v6 }
 0x1ba   : > { %2854 = vmatprep.subr.bf16.mxu1 %v3478_v6  ;;  %2877 = vmatpush3.msra.mxu0 %v729_v31 }
 0x1bb   : > { %2890 = vmatprep.subr.bf16.mxu0 %v3478_v6 }
 0x1bd   : > { %2855 = vmatpush3.bf16.msra.mxu1 %v3123_v18 }
 0x1be   : > { %2868 = vmatprep.subr.mxu1 %v729_v31 }
 0x1c0   : > { %2857 = vmatmul.mubr.msk.bf16.vlgmr.msra.gmra.mrb[4].mxu1 %vm732_vm1, %v748_v17 }
 0x1c1   : > { %2869 = vmatpush3.msra.mxu1 %v729_v31 }
 0x1c2   : > { %2884 = vmatprep.subr.bf16.mxu1 %v3478_v6 }
 0x28b   : > { %v4008_v19 = vpop.f32.mrb[0].mxu1  ;;  %v4010_v20 = vpop.f32.mrb[0].mxu0 }
 0x28c   : > { %v2866_v21 = vpop.f32.mrb[1].mxu0  ;;  %921 = vrot.lane.b32.xlu1 %v4008_v19, %s3480_s24  ;;  %v2850_v22 = vpop.f32.mrb[1].mxu1 }
 0x28d   : > { %v805_v23 = vpop.f32.mrb[2].mxu1  ;;  %v917_v24 = vpop.f32.mrb[2].mxu0 }
 0x28e   : > { %v2851_v25 = vpop.f32.mrb[3].mxu1  ;;  %v2867_v26 = vpop.f32.mrb[3].mxu0 }
 0x293   : > { %v858_v27 = vpop.f32.mrb[4].mxu1 }
 0x294   : > { %1070 = vrot.lane.b32.xlu1 %v858_v27, %s3481_s25  ;;  %1067 = vrot.lane.b32.xlu0 %v858_v27, %s3480_s24  ;;  %v2858_v28 = vpop.f32.mrb[5].mxu1 }
 0x295   : > { %v861_v29 = vpop.f32.mrb[6].mxu1 }
 0x296   : > { %v2859_v30 = vpop.f32.mrb[7].mxu1 }
 0x298   : > { %1073 = vrot.lane.b32.xlu1 %v858_v27, %s3482_s1 }
 0x29c   : > { %924 = vrot.lane.b32.xlu1 %v4008_v19, %s3481_s25 }
 0x2a0   : > { %927 = vrot.lane.b32.xlu1 %v4008_v19, %s3482_s1 }
 0x2fe   : > { %v922_v35 = vpop.permute.xlu1 %921 }
 0x306   : > { %v1071_v40 = vpop.permute.xlu1 %1070  ;;  %v1068_v45 = vpop.permute.xlu0 %1067 }
 0x307   : > { %v1076_v43 = vcombine.low %v858_v27, %v1071_v40  ;;  %v1077_v44 = vcombine.high %v858_v27, %v1071_v40 }
 0x309   : > { %v1084_v50 = vrot.slane %v1076_v43, %v4030_v42  ;;  %v1091_v51 = vrot.slane %v1077_v44, %v4030_v42 }
 0x30a   : > { %v1074_v46 = vpop.permute.xlu1 %1073 }
 0x30b   : > { %v1092_v47 = vcombine.low %v1068_v45, %v1074_v46  ;;  %v1093_v48 = vcombine.high %v1068_v45, %v1074_v46 }
 0x30d   : > { %v1100_v52 = vrot.slane %v1092_v47, %v4030_v42  ;;  %v1107_v53 = vrot.slane %v1093_v48, %v4030_v42 }
 0x30e   : > { %v925_v54 = vpop.permute.xlu1 %924 }
 0x30f   : > { %v1108_v55 = vcombine.low %v1084_v50, %v1100_v52  ;;  %v1109_v56 = vcombine.high %v1084_v50, %v1100_v52  ;;  %v1124_v57 = vcombine.low %v1091_v51, %v1107_v53  ;;  %v1125_v58 = vcombine.high %v1091_v51, %v1107_v53 }
 0x310   : > { %v930_v63 = vcombine.low %v4008_v19, %v925_v54  ;;  %v931_v0 = vcombine.high %v4008_v19, %v925_v54 }
 0x311   : > { %v1116_v59 = vrot.slane %v1108_v55, %v4033_v49  ;;  %v1123_v60 = vrot.slane %v1109_v56, %v4033_v49  ;;  %v1132_v61 = vrot.slane %v1124_v57, %v4033_v49  ;;  %v1139_v62 = vrot.slane %v1125_v58, %v4033_v49 }
 0x312   : > { %v928_v2 = vpop.permute.xlu1 %927  ;;  %v938_v14 = vrot.slane %v930_v63, %v4030_v42  ;;  %v945_v15 = vrot.slane %v931_v0, %v4030_v42  ;;  %v727_v63 = vld [vmem:[#allocation5] sm:$0xff]  ;;  %v728_v0 = vld [vmem:[#allocation7] sm:$0xff] }
 0x313   : > { %v1144_v3 = vcombine.low %v1116_v59, %v1123_v60  ;;  %v2746_v4 = vcombine.high %v1116_v59, %v1123_v60  ;;  %v1160_v5 = vcombine.low %v1132_v61, %v1139_v62  ;;  %v2747_v7 = vcombine.high %v1132_v61, %v1139_v62 }
 0x314   : > { %v946_v8 = vcombine.low %v922_v35, %v928_v2  ;;  %v947_v9 = vcombine.high %v922_v35, %v928_v2 }
 0x315   : > { %v1151_v10 = vrot.slane %v1144_v3, %v4030_v42  ;;  %v1159_v11 = vrot.slane %v2746_v4, %v4030_v42  ;;  %v1167_v12 = vrot.slane %v1160_v5, %v4030_v42  ;;  %v1175_v13 = vrot.slane %v2747_v7, %v4030_v42 }
 0x316   : > { %v954_v16 = vrot.slane %v946_v8, %v4030_v42  ;;  %v961_v17 = vrot.slane %v947_v9, %v4030_v42 }
 0x317   : > { %v1176_v18 = vcombine.low %v1151_v10, %v1159_v11  ;;  %v1192_v19 = vcombine.low %v1167_v12, %v1175_v13  ;;  %v1177_v21 = vcombine.high %v1151_v10, %v1159_v11  ;;  %v1193_v22 = vcombine.high %v1167_v12, %v1175_v13 }
 0x318   : > { %v962_v23 = vcombine.low %v938_v14, %v954_v16  ;;  %v963_v24 = vcombine.high %v938_v14, %v954_v16  ;;  %v978_v25 = vcombine.low %v945_v15, %v961_v17  ;;  %v979_v26 = vcombine.high %v945_v15, %v961_v17 }
 0x319   : > { %v1184_v27 = vrot.slane %v1176_v18, %v4033_v49  ;;  %v1200_v28 = vrot.slane %v1192_v19, %v4033_v49  ;;  %v1191_v29 = vrot.slane %v1177_v21, %v4033_v49  ;;  %v1207_v30 = vrot.slane %v1193_v22, %v4033_v49 }
 0x31a   : > { %v970_v31 = vrot.slane %v962_v23, %v4033_v49  ;;  %v977_v32 = vrot.slane %v963_v24, %v4033_v49  ;;  %v986_v33 = vrot.slane %v978_v25, %v4033_v49  ;;  %v993_v35 = vrot.slane %v979_v26, %v4033_v49 }
 0x31b   : > { %v1208_v36 = vcombine.low %v1184_v27, %v1200_v28  ;;  %v1209_v37 = vcombine.high %v1184_v27, %v1200_v28  ;;  %v1210_v44 = vcombine.low %v1191_v29, %v1207_v30  ;;  %v1211_v50 = vcombine.high %v1191_v29, %v1207_v30 }
 0x31c   : > { %v998_v38 = vcombine.low %v970_v31, %v977_v32  ;;  %v2744_v40 = vcombine.high %v970_v31, %v977_v32  ;;  %v1014_v41 = vcombine.low %v986_v33, %v993_v35  ;;  %v2745_v43 = vcombine.high %v986_v33, %v993_v35 }
 0x31d   : > { %2878 = vmatprep.mubr.msk.f32.mxu0 %vm1358_vm3, %v1208_v36  ;;  %v1574_v3 = vmul.f32 %v1209_v37, %v727_v63  ;;  %v1573_v7 = vmul.f32 %v1208_v36, %v727_v63  ;;  %v1576_v13 = vmul.f32 %v1211_v50, %v727_v63  ;;  %v1575_v17 = vmul.f32 %v1210_v44, %v727_v63 }
 0x31e   : > { %v1005_v45 = vrot.slane %v998_v38, %v4030_v42  ;;  %v1013_v46 = vrot.slane %v2744_v40, %v4030_v42  ;;  %v1021_v47 = vrot.slane %v1014_v41, %v4030_v42  ;;  %v1029_v48 = vrot.slane %v2745_v43, %v4030_v42  ;;  %2879 = vmatmul.mubr.msk.f32.vlgmr.msra.gmra.mrb[4].mxu0 %vm1358_vm3, %v1209_v37 }
 0x31f   : > { %2881 = vmatprep.mubr.msk.f32.mxu0 %vm1358_vm3, %v1210_v44 }
 0x320   : > { %v1030_v51 = vcombine.low %v1005_v45, %v1013_v46  ;;  %v1046_v52 = vcombine.low %v1021_v47, %v1029_v48  ;;  %v1031_v53 = vcombine.high %v1005_v45, %v1013_v46  ;;  %v1047_v54 = vcombine.high %v1021_v47, %v1029_v48 }
 0x322   : > { %2882 = vmatmul.mubr.msk.f32.gmra.mrb[6].mxu0 %vm1358_vm3, %v1211_v50  ;;  %v1038_v55 = vrot.slane %v1030_v51, %v4033_v49  ;;  %v1054_v56 = vrot.slane %v1046_v52, %v4033_v49  ;;  %v1045_v57 = vrot.slane %v1031_v53, %v4033_v49  ;;  %v1061_v58 = vrot.slane %v1047_v54, %v4033_v49 }
 0x323   : > { %2892 = vmatprep.mubr.msk.bf16.mxu0 %vm3479_vm2, %v3478_v6 }
 0x324   : > { %v1062_v59 = vcombine.low %v1038_v55, %v1054_v56  ;;  %v1063_v60 = vcombine.high %v1038_v55, %v1054_v56  ;;  %v1064_v61 = vcombine.low %v1045_v57, %v1061_v58  ;;  %v1065_v62 = vcombine.high %v1045_v57, %v1061_v58 }
 0x325   : > { %v1776_v56 = vand.u32 127, %v935_v34 }
 0x326   : > { %2870 = vmatprep.mubr.msk.f32.mxu1 %vm1358_vm3, %v1062_v59  ;;  %v1457_v25 = vmul.f32 %v1063_v60, %v727_v63  ;;  %v1456_v28 = vmul.f32 %v1062_v59, %v727_v63  ;;  %v1459_v36 = vmul.f32 %v1065_v62, %v727_v63  ;;  %v1458_v43 = vmul.f32 %v1064_v61, %v727_v63 }
 0x327   : > { %2871 = vmatmul.mubr.msk.f32.vlgmr.msra.gmra.mrb[8].mxu1 %vm1358_vm3, %v1063_v60  ;;  %vm1777_vm4 = vcmp.le.s32.totalorder %v1776_v56, %v4027_v39 }
 0x328   : > { %2873 = vmatprep.mubr.msk.f32.mxu1 %vm1358_vm3, %v1064_v61 }
 0x32b   : > { %2874 = vmatmul.mubr.msk.f32.gmra.mrb[10].mxu1 %vm1358_vm3, %v1065_v62 }
 0x32c   : > { %2886 = vmatprep.mubr.msk.bf16.mxu1 %vm3479_vm2, %v3478_v6 }
 0x3f1   : > { %v2880_v2 = vpop.f32.mrb[4].mxu0 }
 0x3f2   : > { %v1578_v4 = vmul.f32 %v2880_v2, %v728_v0  ;;  %v1554_v5 = vpop.f32.mrb[5].mxu0 }
 0x3f3   : > { %v1577_v8 = vmul.f32 %v1554_v5, %v728_v0 }
 0x3f4   : > { %v1582_v9 = vadd.f32 %v1578_v4, %v1574_v3 }
 0x3f5   : > { %v1581_v10 = vadd.f32 %v1577_v8, %v1573_v7  ;;  %v2883_v11 = vpop.f32.mrb[6].mxu0 }
 0x3f6   : > { %v1586_v12 = vpack.c.bf16 %v1582_v9, %v1582_v9  ;;  %v1580_v14 = vmul.f32 %v2883_v11, %v728_v0  ;;  %v1564_v15 = vpop.f32.mrb[7].mxu0 }
 0x3f7   : > { %v1585_v16 = vpack.c.bf16 %v1581_v10, %v1581_v10  ;;  %v1579_v18 = vmul.f32 %v1564_v15, %v728_v0 }
 0x3f8   : > { %v1584_v19 = vadd.f32 %v1580_v14, %v1576_v13  ;;  %v1639_v21 = vsel %vm1358_vm3, %v1586_v12, 0 }
 0x3f9   : > { %v1583_v22 = vadd.f32 %v1579_v18, %v1575_v17  ;;  %2891 = vmatpush3.bf16.xpose.msra.mxu0 %v1639_v21  ;;  %v1593_v23 = vsel %vm1358_vm3, %v1585_v16, 0 }
 0x3fa   : > { %v2872_v24 = vpop.f32.mrb[8].mxu1  ;;  %2885 = vmatpush3.bf16.xpose.msra.mxu1 %v1593_v23  ;;  %2902 = vmatprep.subr.bf16.mxu0 %v3478_v6  ;;  %v1588_v33 = vpack.c.bf16 %v1584_v19, %v1584_v19 }
 0x3fb   : > { %v1461_v26 = vmul.f32 %v2872_v24, %v728_v0  ;;  %v1437_v27 = vpop.f32.mrb[9].mxu1  ;;  %2896 = vmatprep.subr.bf16.mxu1 %v3478_v6  ;;  %v1587_v40 = vpack.c.bf16 %v1583_v22, %v1583_v22 }
 0x3fc   : > { %v1460_v29 = vmul.f32 %v1437_v27, %v728_v0  ;;  %v1731_v50 = vsel %vm1358_vm3, %v1588_v33, 0 }
 0x3fd   : > { %v1465_v30 = vadd.f32 %v1461_v26, %v1457_v25  ;;  %v1685_v51 = vsel %vm1358_vm3, %v1587_v40, 0 }
 0x3fe   : > { %v1464_v31 = vadd.f32 %v1460_v29, %v1456_v28  ;;  %v2875_v32 = vpop.f32.mrb[10].mxu1 }
 0x3ff   : > { %v1469_v35 = vmul.f32 0.35355338, %v1465_v30  ;;  %v1463_v37 = vmul.f32 %v2875_v32, %v728_v0  ;;  %v1447_v38 = vpop.f32.mrb[11].mxu1 }
 0x400   : > { %v1468_v41 = vmul.f32 0.35355338, %v1464_v31  ;;  %v1462_v44 = vmul.f32 %v1447_v38, %v728_v0 }
 0x401   : > { %v1473_v45 = vpack.c.bf16 %v1469_v35, %v1469_v35  ;;  %v1467_v46 = vadd.f32 %v1463_v37, %v1459_v36 }
 0x402   : > { %v1472_v47 = vpack.c.bf16 %v1468_v41, %v1468_v41  ;;  %v1466_v48 = vadd.f32 %v1462_v44, %v1458_v43 }
 0x403   : > { %2893 = vmatmul.mubr.msk.bf16.vlgmr.msra.gmra.mrb[8].mxu0 %vm1358_vm3, %v1473_v45  ;;  %v1471_v52 = vmul.f32 0.35355338, %v1467_v46 }
 0x404   : > { %2903 = vmatpush3.bf16.xpose.msra.mxu0 %v1731_v50  ;;  %2887 = vmatmul.mubr.msk.bf16.vlgmr.msra.gmra.mrb[12].mxu1 %vm1358_vm3, %v1472_v47  ;;  %v1470_v53 = vmul.f32 0.35355338, %v1466_v48 }
 0x405   : > { %2897 = vmatpush3.bf16.xpose.msra.mxu1 %v1685_v51  ;;  %2904 = vmatprep.mubr.msk.bf16.mxu0 %vm3479_vm2, %v3478_v6  ;;  %v1475_v54 = vpack.c.bf16 %v1471_v52, %v1471_v52 }
 0x406   : > { %2898 = vmatprep.mubr.msk.bf16.mxu1 %vm3479_vm2, %v3478_v6  ;;  %2908 = vmatprep.subr.bf16.mxu1 %v3478_v6  ;;  %v1474_v55 = vpack.c.bf16 %v1470_v53, %v1470_v53 }
 0x407   : > { %2914 = vmatprep.subr.bf16.mxu0 %v3478_v6 }
 0x40b   : > { %2905 = vmatmul.mubr.msk.bf16.vlgmr.msra.gmra.mrb[12].mxu0 %vm1358_vm3, %v1475_v54 }
 0x40c   : > { %2899 = vmatmul.mubr.msk.bf16.vlgmr.msra.gmra.mrb[16].mxu1 %vm1358_vm3, %v1474_v55  ;;  %2916 = vmatprep.mubr.msk.bf16.mxu0 %vm3479_vm2, %v3478_v6 }
 0x40d   : > { %2910 = vmatprep.mubr.msk.bf16.mxu1 %vm3479_vm2, %v3478_v6 }
 0x4d6   : > { %v1675_v57 = vpop.f32.mrb[8].mxu0 }
 0x4d7   : > { %v1781_v58 = vsel %vm1777_vm4, %v1675_v57, -1e+30  ;;  %v1629_v59 = vpop.f32.mrb[12].mxu1  ;;  %v2894_v60 = vpop.f32.mrb[9].mxu0 }
 0x4d8   : > { %v1780_v61 = vsel %vm1777_vm4, %v1629_v59, -1e+30  ;;  %v2888_v62 = vpop.f32.mrb[13].mxu1  ;;  %v1678_v63 = vpop.f32.mrb[10].mxu0  ;;  %v1787_v0 = vsel %vm1358_vm3, %v1781_v58, -inf }
 0x4d9   : > { %1788 = vmax.xlane.f32.xlu0 %v1787_v0  ;;  %v1632_v2 = vpop.f32.mrb[14].mxu1  ;;  %v2895_v3 = vpop.f32.mrb[11].mxu0  ;;  %v1784_v34 = vsel %vm1358_vm3, %v1780_v61, -inf }
 0x4da   : > { %1785 = vmax.xlane.f32.xlu1 %v1784_v34  ;;  %v2889_v4 = vpop.f32.mrb[15].mxu1 }
 0x4de   : > { %v1767_v5 = vpop.f32.mrb[12].mxu0 }
 0x4df   : > { %v1783_v7 = vsel %vm1777_vm4, %v1767_v5, -1e+30  ;;  %v1721_v8 = vpop.f32.mrb[16].mxu1  ;;  %v2906_v9 = vpop.f32.mrb[13].mxu0 }
 0x4e0   : > { %v1782_v10 = vsel %vm1777_vm4, %v1721_v8, -1e+30  ;;  %v2900_v11 = vpop.f32.mrb[17].mxu1  ;;  %v1770_v12 = vpop.f32.mrb[14].mxu0  ;;  %v1793_v13 = vsel %vm1358_vm3, %v1783_v7, -inf }
 0x4e1   : > { %1794 = vmax.xlane.f32.xlu0 %v1793_v13  ;;  %v1724_v14 = vpop.f32.mrb[18].mxu1  ;;  %v2907_v15 = vpop.f32.mrb[15].mxu0  ;;  %v1790_v16 = vsel %vm1358_vm3, %v1782_v10, -inf }
 0x4e2   : > { %1791 = vmax.xlane.f32.xlu1 %v1790_v16  ;;  %v2901_v17 = vpop.f32.mrb[19].mxu1 }
 0x4f3   : > { %1213 = vrot.lane.b32.xlu1 %v4010_v20, %s3480_s24  ;;  %s4445_s24 = smov %s4444_s29 }
 0x566   : > { %v1789_v18 = vpop.xlane.xlu0 %1788 }
 0x567   : > { %v1797_v19 = vsub.f32 %v1781_v58, %v1789_v18  ;;  %v1786_v21 = vpop.xlane.xlu1 %1785 }
 0x568   : > { %v1796_v22 = vsub.f32 %v1780_v61, %v1786_v21 }
 0x569   : > { %v1802_v39 = vmul.f32 1.442695, %v1797_v19 }
 0x56a   : > { %v1800_v23 = vmul.f32 1.442695, %v1796_v22 }
 0x56b   : > { %3136 = vpow2.f32 %v1802_v39 }
 0x56c   : > { %3138 = vpow2.f32 %v1800_v23 }
 0x56e   : > { %v1795_v28 = vpop.xlane.xlu0 %1794 }
 0x56f   : > { %v1792_v29 = vpop.xlane.xlu1 %1791  ;;  %v1799_v30 = vsub.f32 %v1783_v7, %v1795_v28 }
 0x570   : > { %v1798_v31 = vsub.f32 %v1782_v10, %v1792_v29 }
 0x571   : > { %v1806_v32 = vmul.f32 1.442695, %v1799_v30 }
 0x572   : > { %v1804_v33 = vmul.f32 1.442695, %v1798_v31 }
 0x573   : > { %3140 = vpow2.f32 %v1806_v32  ;;  %v1214_v40 = vpop.permute.xlu1 %1213 }
 0x574   : > { %3142 = vpow2.f32 %v1804_v33 }
 0x575   : > { %v4117_v24 = vpop.eup %3136 }
 0x576   : > { %v4119_v25 = vpop.eup %3138  ;;  %v1811_v26 = vsel %vm1358_vm3, %v4117_v24, 0.0 }
 0x577   : > { %1812 = vadd.xlane.f32.xlu0 %v1811_v26  ;;  %v1808_v27 = vsel %vm1358_vm3, %v4119_v25, 0.0 }
 0x578   : > { %1809 = vadd.xlane.f32.xlu1 %v1808_v27 }
 0x57d   : > { %v4129_v35 = vpop.eup %3140 }
 0x57e   : > { %v4131_v36 = vpop.eup %3142  ;;  %v1817_v37 = vsel %vm1358_vm3, %v4129_v35, 0.0 }
 0x57f   : > { %v1814_v38 = vsel %vm1358_vm3, %v4131_v36, 0.0 }
 0x589   : > { %1219 = vrot.lane.b32.xlu1 %v4010_v20, %s3482_s1  ;;  %s3334_s1 = scalar_lea.vmem %s4247_s20, 128 }
 0x58a   : > { %p3335_p7 = scmp.ne.s32.totalorder %s4247_s20, %s3334_s1  ;;  %p3342_p2 = scmp.lt.s32.totalorder %s3340_s19, %s3334_s1 }
 0x58c   : > { %p3336_p5 = pnand %p3335_p7, %p4446_p13  ;;  %p3343_p4 = por %p3342_p2, %p3341_p12 }
 0x58d   : > { %1216 = vrot.lane.b32.xlu0 %v4010_v20, %s3481_s25  ;;  %s2455_s25 = scalar_lea.sflag [#allocation4], %s3914_s4 }
 0x58e   : > { %p3337_p1 = pneg %p3336_p5 }
 0x590   : > { %p3344_p3 = pnand %p3343_p4, %p3337_p1 }
 0x5ac   : > { %1818 = vadd.xlane.f32.xlu0 %v1817_v37 }
 0x5ad   : > { %1815 = vadd.xlane.f32.xlu1 %v1814_v38 }
 0x604   : > { %v1813_v41 = vpop.xlane.xlu0 %1812 }
 0x605   : > { %v1810_v43 = vpop.xlane.xlu1 %1809  ;;  %3144 = vrcp.f32 %v1813_v41 }
 0x606   : > { %3146 = vrcp.f32 %v1810_v43 }
 0x608   : > { %v1217_v44 = vpop.permute.xlu0 %1216 }
 0x609   : > { %v1222_v45 = vcombine.low %v4010_v20, %v1217_v44  ;;  %v1223_v46 = vcombine.high %v4010_v20, %v1217_v44  ;;  %v1220_v47 = vpop.permute.xlu1 %1219 }
 0x60a   : > { %v1238_v48 = vcombine.low %v1214_v40, %v1220_v47  ;;  %v1239_v50 = vcombine.high %v1214_v40, %v1220_v47 }
 0x60b   : > { %v1230_v51 = vrot.slane %v1222_v45, %v4030_v42  ;;  %v1237_v52 = vrot.slane %v1223_v46, %v4030_v42  ;;  %v3124_v46 = vld [vmem:[%s4436_s5] sm:$0xff]  }
 0x60c   : > { %v1246_v53 = vrot.slane %v1238_v48, %v4030_v42  ;;  %v1253_v54 = vrot.slane %v1239_v50, %v4030_v42 }
 0x60e   : > { %v1254_v55 = vcombine.low %v1230_v51, %v1246_v53  ;;  %v1255_v56 = vcombine.high %v1230_v51, %v1246_v53  ;;  %v1270_v57 = vcombine.low %v1237_v52, %v1253_v54  ;;  %v1271_v58 = vcombine.high %v1237_v52, %v1253_v54 }
 0x60f   : > { %v3145_v13 = vpop.eup %3144 }
 0x610   : > { %v1262_v59 = vrot.slane %v1254_v55, %v4033_v49  ;;  %v1269_v20 = vrot.slane %v1255_v56, %v4033_v49  ;;  %v1278_v60 = vrot.slane %v1270_v57, %v4033_v49  ;;  %v1285_v61 = vrot.slane %v1271_v58, %v4033_v49  ;;  %v3147_v16 = vpop.eup %3146 }
 0x611   : > { %v1825_v22 = vmul.f32 %v3145_v13, %v4117_v24  ;;  %v1824_v39 = vmul.f32 %v3147_v16, %v4119_v25 }
 0x612   : > { %v1290_v62 = vcombine.low %v1262_v59, %v1269_v20  ;;  %v2748_v63 = vcombine.high %v1262_v59, %v1269_v20  ;;  %v1306_v0 = vcombine.low %v1278_v60, %v1285_v61  ;;  %v2749_v2 = vcombine.high %v1278_v60, %v1285_v61 }
 0x613   : > { %v1828_v31 = vpack.c.bf16 %v1824_v39, %v1824_v39  ;;  %v1829_v32 = vpack.c.bf16 %v1825_v22, %v1825_v22 }
 0x614   : > { %v1297_v3 = vrot.slane %v1290_v62, %v4030_v42  ;;  %v1305_v34 = vrot.slane %v2748_v63, %v4030_v42  ;;  %v1313_v4 = vrot.slane %v1306_v0, %v4030_v42  ;;  %v1321_v5 = vrot.slane %v2749_v2, %v4030_v42 }
 0x616   : > { %v1322_v7 = vcombine.low %v1297_v3, %v1305_v34  ;;  %v1323_v8 = vcombine.high %v1297_v3, %v1305_v34  ;;  %v1338_v9 = vcombine.low %v1313_v4, %v1321_v5  ;;  %v1339_v10 = vcombine.high %v1313_v4, %v1321_v5 }
 0x618   : > { %v1330_v11 = vrot.slane %v1322_v7, %v4033_v49  ;;  %v1337_v12 = vrot.slane %v1323_v8, %v4033_v49  ;;  %v1346_v14 = vrot.slane %v1338_v9, %v4033_v49  ;;  %v1353_v15 = vrot.slane %v1339_v10, %v4033_v49  ;;  %v3125_v10 = vld [vmem:[%s4437_s3 + $0x8] sm:$0xff]  }
 0x61a   : > { %v1354_v17 = vcombine.low %v1330_v11, %v1346_v14  ;;  %v1355_v18 = vcombine.high %v1330_v11, %v1346_v14  ;;  %v1356_v19 = vcombine.low %v1337_v12, %v1353_v15  ;;  %v1357_v21 = vcombine.high %v1337_v12, %v1353_v15 }
 0x61c   : > { %v1832_v23 = vpack.c.bf16 %v1354_v17, %v1354_v17  ;;  %v1833_v26 = vpack.c.bf16 %v1355_v18, %v1355_v18  ;;  %v1834_v29 = vpack.c.bf16 %v1356_v19, %v1356_v19  ;;  %v1835_v30 = vpack.c.bf16 %v1357_v21, %v1357_v21 }
 0x61e   : > { %v1841_v27 = vsel %vm1839_vm5, %v1832_v23, 0  ;;  %v1887_v28 = vsel %vm1839_vm5, %v1833_v26, 0  ;;  %v1933_v24 = vsel %vm1839_vm5, %v1834_v29, 0  ;;  %v1979_v25 = vsel %vm1839_vm5, %v1835_v30, 0 }
 0x61f   : > { %2909 = vmatpush3.bf16.msra.mxu1 %v1841_v27  ;;  %2915 = vmatpush3.bf16.msra.mxu0 %v1887_v28 }
 0x620   : > { %2920 = vmatprep.subr.bf16.mxu1 %v3478_v6  ;;  %2926 = vmatprep.subr.bf16.mxu0 %v3478_v6 }
 0x622   : > { %2911 = vmatmul.mubr.msk.bf16.vlgmr.msra.gmra.mrb[20].mxu1 %vm1358_vm3, %v1828_v31  ;;  %2917 = vmatmul.mubr.msk.bf16.vlgmr.msra.gmra.mrb[16].mxu0 %vm1358_vm3, %v1829_v32 }
 0x623   : > { %2921 = vmatpush3.bf16.msra.mxu1 %v1933_v24  ;;  %2927 = vmatpush3.bf16.msra.mxu0 %v1979_v25 }
 0x624   : > { %2928 = vmatprep.mubr.msk.bf16.mxu0 %vm3479_vm2, %v3478_v6  ;;  %2922 = vmatprep.mubr.msk.bf16.mxu1 %vm3479_vm2, %v3478_v6 }
 0x625   : > { %2932 = vmatprep.subr.bf16.mxu1 %v3478_v6  ;;  %2940 = vmatprep.subr.bf16.mxu0 %v3478_v6 }
 0x639   : > { %v1819_v33 = vpop.xlane.xlu0 %1818 }
 0x63a   : > { %3148 = vrcp.f32 %v1819_v33  ;;  %v1816_v37 = vpop.xlane.xlu1 %1815 }
 0x63b   : > { %3150 = vrcp.f32 %v1816_v37 }
 0x644   : > { %v3149_v38 = vpop.eup %3148 }
 0x645   : > { %v3151_v40 = vpop.eup %3150  ;;  %v1827_v41 = vmul.f32 %v3149_v38, %v4129_v35 }
 0x646   : > { %v1826_v43 = vmul.f32 %v3151_v40, %v4131_v36 }
 0x647   : > { %v1831_v44 = vpack.c.bf16 %v1827_v41, %v1827_v41 }
 0x648   : > { %v1830_v45 = vpack.c.bf16 %v1826_v43, %v1826_v43 }
 0x649   : > { %2929 = vmatmul.mubr.msk.bf16.vlgmr.msra.gmra.mrb[20].mxu0 %vm1358_vm3, %v1831_v44 }
 0x64a   : > { %2923 = vmatmul.mubr.msk.bf16.vlgmr.msra.gmra.mrb[24].mxu1 %vm1358_vm3, %v1830_v45  ;;  %2944 = vmatprep.mubr.msk.bf16.mxu0 %vm3479_vm2, %v3478_v6 }
 0x64b   : > { %2936 = vmatprep.mubr.msk.bf16.mxu1 %vm3479_vm2, %v3478_v6  ;;  %2933 = vmatpush3.bf16.msra.mxu1 %v3124_v46 }
 0x64c   : > { %2934 = vmatprep.subr.bf16.mxu1 %v3478_v6 }
 0x64f   : > { %2935 = vmatpush3.bf16.msra.mxu1 %v3125_v10 }
 0x650   : > { %2948 = vmatprep.subr.bf16.mxu1 %v3478_v6 }
 0x6f5   : > { %v1877_v35 = vpop.f32.mrb[20].mxu1  ;;  %v1923_v47 = vpop.f32.mrb[16].mxu0 }
 0x6f6   : > { %v2912_v36 = vpop.f32.mrb[21].mxu1  ;;  %v2918_v48 = vpop.f32.mrb[17].mxu0 }
 0x6f7   : > { %v1880_v50 = vpop.f32.mrb[22].mxu1  ;;  %v1926_v51 = vpop.f32.mrb[18].mxu0 }
 0x6f8   : > { %v2913_v52 = vpop.f32.mrb[23].mxu1  ;;  %v2919_v53 = vpop.f32.mrb[19].mxu0  ;;  %v3126_v51 = vld [vmem:[%s4438_s15] sm:$0xff]  }
 0x6f9   : > { %v3127_v52 = vld [vmem:[%s4439_s23] sm:$0xff]   ;;  %2941 = vmatpush3.bf16.msra.mxu0 %v3126_v51  ;;  %v3128_v53 = vld [vmem:[%s4440_s22 + $0x8] sm:$0xff]  }
 0x6fa   : > { %2942 = vmatprep.subr.bf16.mxu0 %v3478_v6 }
 0x6fd   : > { %2943 = vmatpush3.bf16.msra.mxu0 %v3128_v53 }
 0x6fe   : > { %2956 = vmatprep.subr.bf16.mxu0 %v3478_v6 }
 0x71c   : > { %v2015_v54 = vpop.f32.mrb[20].mxu0 }
 0x71d   : > { %v2037_v55 = vcombine.low %v1923_v47, %v2015_v54  ;;  %v2038_v56 = vcombine.high %v1923_v47, %v2015_v54  ;;  %v1969_v57 = vpop.f32.mrb[24].mxu1  ;;  %v2930_v58 = vpop.f32.mrb[21].mxu0 }
 0x71e   : > { %v2021_v59 = vcombine.low %v1877_v35, %v1969_v57  ;;  %v2022_v20 = vcombine.high %v1877_v35, %v1969_v57  ;;  %v2924_v60 = vpop.f32.mrb[25].mxu1  ;;  %v2018_v61 = vpop.f32.mrb[22].mxu0  ;;  %v2771_v58 = vld [vmem:[%s712_s11] ss:$0 sm:$0xff]  ;;  %s4443_s11 = sld [smem:[#allocation24_spill]] }
 0x71f   : > { %v2045_v62 = vrot.slane %v2037_v55, %v4030_v42  ;;  %v2052_v63 = vrot.slane %v2038_v56, %v4030_v42  ;;  %v1972_v0 = vpop.f32.mrb[26].mxu1  ;;  %v2931_v2 = vpop.f32.mrb[23].mxu0  ;;  %v3130_v61 = vld [vmem:[%s3971_s27] sm:$0xff]  }
 0x720   : > { %v2029_v3 = vrot.slane %v2021_v59, %v4030_v42  ;;  %v2036_v34 = vrot.slane %v2022_v20, %v4030_v42  ;;  %v2925_v4 = vpop.f32.mrb[27].mxu1  ;;  %v3133_v0 = vld [vmem:[%s3971_s27 + $0x18] sm:$0xff]  }
 0x722   : > { %v2053_v5 = vcombine.low %v2029_v3, %v2045_v62  ;;  %v2054_v7 = vcombine.high %v2029_v3, %v2045_v62  ;;  %v2069_v8 = vcombine.low %v2036_v34, %v2052_v63  ;;  %v2070_v9 = vcombine.high %v2036_v34, %v2052_v63  ;;  %v3131_v62 = vld [vmem:[%s3971_s27 + $0x8] sm:$0xff]   ;;  %v3132_v63 = vld [vmem:[%s3971_s27 + $0x10] sm:$0xff]  }
 0x724   : > { %v2061_v11 = vrot.slane %v2053_v5, %v4033_v49  ;;  %v2068_v12 = vrot.slane %v2054_v7, %v4033_v49  ;;  %v2077_v13 = vrot.slane %v2069_v8, %v4033_v49  ;;  %v2084_v14 = vrot.slane %v2070_v9, %v4033_v49  ;;  %s2785_s27 = sshll.u32 %s4443_s11, 7 }
 0x725   : > { %s4245_s30 = scalar_lea.hbm %s4444_s29, %s2785_s27 }
 0x726   : > { %v2089_v15 = vcombine.low %v2061_v11, %v2068_v12  ;;  %v2766_v16 = vcombine.high %v2061_v11, %v2068_v12  ;;  %v2105_v17 = vcombine.low %v2077_v13, %v2084_v14  ;;  %v2767_v18 = vcombine.high %v2077_v13, %v2084_v14 }
 0x728   : > { %v2096_v19 = vrot.slane %v2089_v15, %v4030_v42  ;;  %v2104_v21 = vrot.slane %v2766_v16, %v4030_v42  ;;  %v2112_v22 = vrot.slane %v2105_v17, %v4030_v42  ;;  %v2120_v39 = vrot.slane %v2767_v18, %v4030_v42 }
 0x72a   : > { %v2122_v23 = vcombine.high %v2096_v19, %v2104_v21  ;;  %v2138_v26 = vcombine.high %v2112_v22, %v2120_v39  ;;  %v2121_v27 = vcombine.low %v2096_v19, %v2104_v21  ;;  %v2137_v28 = vcombine.low %v2112_v22, %v2120_v39 }
 0x72c   : > { %v2136_v29 = vrot.slane %v2122_v23, %v4033_v49  ;;  %v2152_v30 = vrot.slane %v2138_v26, %v4033_v49  ;;  %v2129_v31 = vrot.slane %v2121_v27, %v4033_v49  ;;  %v2145_v32 = vrot.slane %v2137_v28, %v4033_v49 }
 0x72e   : > { %v2155_v24 = vcombine.low %v2136_v29, %v2152_v30  ;;  %v2154_v25 = vcombine.high %v2129_v31, %v2145_v32  ;;  %v2156_v33 = vcombine.high %v2136_v29, %v2152_v30  ;;  %v2153_v37 = vcombine.low %v2129_v31, %v2145_v32 }
 0x730   : > { %2162 = vrot.lane.b32.xlu1 %v2155_v24, %s3485_s21  ;;  %2158 = vrot.lane.b32.xlu0 %v2154_v25, %s3486_s8 }
 0x734   : > { %2166 = vrot.lane.b32.xlu1 %v2156_v33, %s3487_s7 }
 0x7a2   : > { %v2163_v42 = vpop.permute.xlu1 %2162  ;;  %v2159_v38 = vpop.permute.xlu0 %2158 }
 0x7a3   : > { %v2169_v40 = vsel %vm1358_vm3, %v2153_v37, %v2159_v38 }
 0x7a4   : > { %v2171_v49 = vsel %vm2170_vm6, %v2169_v40, %v2163_v42 }
 0x7a6   : > { %v2167_v41 = vpop.permute.xlu1 %2166 }
 0x7a7   : > { %v2173_v43 = vsel %vm2172_vm7, %v2171_v49, %v2167_v41 }
 0x7a8   : > { %v2174_v44 = vpack.c.bf16 %v2173_v43, %v2173_v43 }
 0x7aa   : > { %2937 = vmatmul.mubr.msk.bf16.vlgmr.msra.gmra.mrb[28].mxu1 %vm732_vm1, %v2174_v44 }
 0x7ab   : > { %2952 = vmatprep.mubr.msk.bf16.mxu1 %vm3479_vm2, %v3478_v6  ;;  %2949 = vmatpush3.bf16.msra.mxu1 %v3127_v52 }
 0x7ac   : > { %2950 = vmatprep.subr.bf16.mxu1 %v3478_v6 }
 0x87d   : > { %v2228_v45 = vpop.f32.mrb[28].mxu1 }
 0x87e   : > { %v4206_v46 = vadd.f32 %v2228_v45, %v3980_v1  ;;  %v2938_v35 = vpop.f32.mrb[29].mxu1  ;;  %v3129_v1 = vld [vmem:[%s4441_s6 + $0x8] sm:$0xff]  }
 0x87f   : > { %v2231_v47 = vpop.f32.mrb[30].mxu1  ;;  %2951 = vmatpush3.bf16.msra.mxu1 %v3129_v1 }
 0x880   : > { %v2939_v36 = vpop.f32.mrb[31].mxu1  ;;  %v2236_v48 = vmul.f32 %v4206_v46, %v4206_v46 }
 0x882   : > { %v2237_v50 = vsel %vm732_vm1, %v2236_v48, 0.0 }
 0x883   : > { %2238 = vadd.xlane.f32.xlu0 %v2237_v50 }
 0x910   : > { %v2239_v54 = vpop.xlane.xlu0 %2238 }
 0x911   : > { %v2240_v55 = vmul.f32 0.03125, %v2239_v54 }
 0x913   : > { %v2241_v56 = vadd.f32 1e-06, %v2240_v55 }
 0x915   : > { %3152 = vrsqrt.f32 %v2241_v56 }
 0x91f   : > { %v3153_v57 = vpop.eup %3152 }
 0x920   : > { %v2243_v59 = vmul.f32 %v3153_v57, %v4206_v46 }
 0x922   : > { %v2250_v20 = vmul.f32 %v2771_v58, %v2243_v59 }
 0x924   : > { %v2251_v60 = vpack.c.bf16 %v2250_v20, %v2250_v20 }
 0x926   : > { %2945 = vmatmul.mubr.msk.bf16.vlgmr.msra.gmra.mrb[24].mxu0 %vm732_vm1, %v2251_v60  ;;  %2953 = vmatmul.mubr.msk.bf16.vlgmr.msra.gmra.mrb[32].mxu1 %vm732_vm1, %v2251_v60 }
 0x927   : > { %2964 = vmatprep.mubr.msk.bf16.mxu0 %vm3479_vm2, %v3478_v6  ;;  %2957 = vmatpush3.bf16.msra.mxu0 %v3130_v61 }
 0x928   : > { %2958 = vmatprep.subr.bf16.mxu0 %v3478_v6 }
 0x92b   : > { %2959 = vmatpush3.bf16.msra.mxu0 %v3131_v62 }
 0x92c   : > { %2960 = vmatprep.subr.bf16.mxu0 %v3478_v6 }
 0x92f   : > { %2961 = vmatpush3.bf16.msra.mxu0 %v3132_v63 }
 0x930   : > { %2962 = vmatprep.subr.bf16.mxu0 %v3478_v6 }
 0x933   : > { %2963 = vmatpush3.bf16.msra.mxu0 %v3133_v0 }
 0x9f9   : > { %v2305_v2 = vpop.f32.mrb[24].mxu0  ;;  %v2361_v3 = vpop.f32.mrb[32].mxu1 }
 0x9fa   : > { %v2778_v34 = vmul.f32 -1.442695, %v2305_v2  ;;  %v2946_v4 = vpop.f32.mrb[25].mxu0  ;;  %v2954_v5 = vpop.f32.mrb[33].mxu1 }
 0x9fb   : > { %v2308_v7 = vpop.f32.mrb[26].mxu0  ;;  %v2364_v8 = vpop.f32.mrb[34].mxu1 }
 0x9fc   : > { %3154 = vpow2.f32 %v2778_v34  ;;  %v2947_v9 = vpop.f32.mrb[27].mxu0  ;;  %v2955_v10 = vpop.f32.mrb[35].mxu1 }
 0xa06   : > { %v3155_v11 = vpop.eup %3154 }
 0xa07   : > { %v2370_v12 = vadd.f32 1.0, %v3155_v11 }
 0xa09   : > { %3156 = vrcp.f32 %v2370_v12 }
 0xa13   : > { %v3157_v13 = vpop.eup %3156 }
 0xa14   : > { %v2373_v6 = vmul.f32 %v3157_v13, %v2305_v2 }
 0xa16   : > { %v2374_v14 = vmul.f32 %v2373_v6, %v2361_v3 }
 0xa18   : > { %v2375_v15 = vpack.c.bf16 %v2374_v14, %v2374_v14 }
 0xa1a   : > { %2965 = vmatmul.mubr.msk.bf16.vlgmr.msra.gmra.mrb[28].mxu0 %vm2408_vm8, %v2375_v15 }
 0xaed   : > { %v2446_v16 = vpop.f32.mrb[28].mxu0 }
 0xaee   : > { %v2452_v17 = vadd.f32 %v2446_v16, %v4206_v46  ;;  %v2966_v18 = vpop.f32.mrb[29].mxu0 }
 0xaef   : > { %v2449_v19 = vpop.f32.mrb[30].mxu0 }
 0xaf0   : > { %2453 = vst.msk [vmem:[%s3975_s17] sm:$0xff] %vm732_vm1, %v2452_v17  ;;  %v2967_v21 = vpop.f32.mrb[31].mxu0 }
 0xaf1   : > { %3347 = shalt.err (!%p3344_p3)
}
 0xaf2   : > { %s3348_s4 = scalar_lea.hbm %s4245_s30, 128  ;;  %s3352_s3 = scalar_lea.hbm %s4445_s24, 256 }
 0xaf3   : > { %p3349_p11 = scmp.ne.s32.totalorder %s4245_s30, %s3348_s4  ;;  %p3353_p6 = scmp.lt.u32.totalorder %s4245_s30, %s4445_s24 }
 0xaf4   : > { %p3354_p10 = scmp.lt.u32.totalorder %s3352_s3, %s3348_s4  ;;  %p3356_p7 = scmp.lt.u32.totalorder %s3348_s4, %s4245_s30 }
 0xaf5   : > { %p3350_p9 = pnand %p3349_p11, %p4446_p13 }
 0xaf6   : > { %p3355_p8 = por %p3354_p10, %p3353_p6 }
 0xaf7   : > { %p3351_p0 = pneg %p3350_p9 }
 0xaf8   : > { %p3357_p5 = por %p3356_p7, %p3355_p8 }
 0xafa   : > { %p3358_p1 = pnand %p3357_p5, %p3351_p0 }
 0xafc   : > { %3361 = shalt.err (!%p3358_p1)
}
 0xafd   : > { %2984 = dma.vmem_to_hbm [thread:$0]  (%p4446_p13), %s4247_s20, 128, %s4245_s30, %s2455_s25  }
 0xafe PF: > { %p3015_p12 = scmp.ge.s32.totalorder %s3468_s18, 2  ;;  %s2480_s7 = sand.u32 1, %s3440_s28  }
 0xaff   : > { %p4447_p2 = scmp.ne.s32.totalorder %s4405_s9, 0  ;;  %s2481_s15 = scalar_lea.sflag [#allocation4], %s2480_s7 }
 0xb01   : > { %p3007_p4 = pnand %p3015_p12, %p4447_p2 }
 0xb03   : > { %3423 = dma.done.wait (!%p3007_p4), %s2481_s15, 128  }
 0xb04   : > { %3425 = vsyncadd (!%p3007_p4), %s2481_s15, 4294967168  ;;  %s36_s18 = sadd.s32 1, %s3468_s18   ;;  %s4448_s25 = sld [smem:[#allocation19_spill]] }
 0xb05   : > { %p33_p3 = scmp.ge.s32.totalorder %s36_s18, 6   ;;  %s4449_s26 = sld [smem:[#allocation20_spill]] }
 0xb06   : > { %s4450_s27 = sld [smem:[#allocation30_spill]]  ;;  %s4451_s28 = sld [smem:[#allocation21_spill]] }
 0xb07   : > { %s4452_s29 = sld [smem:[#allocation22_spill]]  ;;  %s4453_s30 = sld [smem:[#allocation32_spill]] }
 0xb08   : > { %s4454_s14 = sld [smem:[#allocation25_spill]]  ;;  %s4455_s15 = sld [smem:[#allocation26_spill]] }
 0xb09   : > { %s4456_s16 = sld [smem:[#allocation29_spill]]  ;;  %s4457_s17 = sld [smem:[#allocation31_spill]] }
 0xb0a   :  { %35 = sbr.rel (!%p33_p3) target bundleno = 29 (0x1d), region = 184 }
 0xb11   :  { %2486 = vsyncpa [#allocation3], 1 }
 0xb12   :  { %2488 = vsyncpa [#allocation3 + $0x1], 1 }
 0xb13   :  { %2489 = vsyncpa [#allocation6], 1 }
 0xb14   :  { %2490 = vsyncpa [#allocation9], 1 }
 0xb15   :  { %2492 = vsyncpa [#allocation9 + $0x1], 1 }
 0xb16   :  { %2493 = vsyncpa [#allocation12], 1 }
 0xb17   :  { %2495 = vsyncpa [#allocation12 + $0x1], 1 }
 0xb18   :  { %2496 = vsyncpa [#allocation4], 1 }
 0xb19   :  { %2498 = vsyncpa [#allocation4 + $0x1], 1 }

</bundles_post_ra>
